<compile_context>
chip_gen: v7x
topology: tpu7x:2x2x1
jax: 0.10.0
libtpu: 0.0.40
codegen_flags: <defaults>
</compile_context>

<pallas_src>
import functools

import jax
import jax.numpy as jnp
from jax.experimental import pallas as pl
from jax.experimental.pallas import tpu as pltpu

BN_EPS = 1e-5
LANE = 128


def _round_up(x: int, m: int) -> int:
    return ((x + m - 1) // m) * m


def actor_ppo_kernel(x_ref, w1_ref, b1_ref, w2_ref, b2_ref, w3_ref, b3_ref,
                     o_ref, s1_sum, s1_sq, s2_sum, s2_sq,
                     *, true_b, tile_b, need_mask):
    p = pl.program_id(0)   # 0: layer-1 stats, 1: layer-2 stats, 2: output
    t = pl.program_id(1)   # batch tile

    inv_n = 1.0 / float(true_b)

    def masked(h):
        # Zero out batch-padding rows so they don't pollute BN statistics.
        if not need_mask:
            return h
        row = jax.lax.broadcasted_iota(jnp.int32, (tile_b, 1), 0) + t * tile_b
        return h * (row < true_b).astype(h.dtype)

    def bn_relu(h, sum_ref, sq_ref):
        # Training-mode BatchNorm1d (biased variance, gamma=1, beta=0) + ReLU.
        # Single-pass E[x^2]-E[x]^2 with f32 accumulation and a non-negativity
        # clamp; activations here are O(1) so cancellation is far below eps.
        mean = sum_ref[...] * inv_n
        var = jnp.maximum(sq_ref[...] * inv_n - mean * mean, 0.0)
        return jnp.maximum((h - mean) * jax.lax.rsqrt(var + BN_EPS), 0.0)

    # Layer-1 pre-activation, recomputed every pass (weights are VMEM-resident
    # and tiny; recompute is cheaper than an HBM round-trip of intermediates).
    x = x_ref[...]
    h1 = jnp.dot(x, w1_ref[...], preferred_element_type=jnp.float32) + b1_ref[...]

    @pl.when(p == 0)
    def _():
        @pl.when(t == 0)
        def _():
            s1_sum[...] = jnp.zeros_like(s1_sum)
            s1_sq[...] = jnp.zeros_like(s1_sq)
        hm = masked(h1)
        s1_sum[...] += jnp.sum(hm, axis=0, keepdims=True)
        s1_sq[...] += jnp.sum(hm * h1, axis=0, keepdims=True)

    @pl.when(p == 1)
    def _():
        @pl.when(t == 0)
        def _():
            s2_sum[...] = jnp.zeros_like(s2_sum)
            s2_sq[...] = jnp.zeros_like(s2_sq)
        a1 = bn_relu(h1, s1_sum, s1_sq)
        h2 = jnp.dot(a1, w2_ref[...], preferred_element_type=jnp.float32) + b2_ref[...]
        hm = masked(h2)
        s2_sum[...] += jnp.sum(hm, axis=0, keepdims=True)
        s2_sq[...] += jnp.sum(hm * h2, axis=0, keepdims=True)

    @pl.when(p == 2)
    def _():
        a1 = bn_relu(h1, s1_sum, s1_sq)
        h2 = jnp.dot(a1, w2_ref[...], preferred_element_type=jnp.float32) + b2_ref[...]
        a2 = bn_relu(h2, s2_sum, s2_sq)
        h3 = jnp.dot(a2, w3_ref[...], preferred_element_type=jnp.float32) + b3_ref[...]
        o_ref[...] = jnp.tanh(h3).astype(o_ref.dtype)


def actor_ppo_forward(state, params, action_dim, *, tile_b=256):
    """state: [B, state_dim] f32; params: lane-padded weights (see init).

    Returns tanh(mlp(state)) of shape [B, action_dim]."""
    w1, b1 = params["w1"], params["b1"]
    w2, b2 = params["w2"], params["b2"]
    w3, b3 = params["w3"], params["b3"]

    B, S = state.shape
    SP, H1P = w1.shape
    H2P = w2.shape[1]
    AP = w3.shape[1]

    # Batch tile: multiple of 8 sublanes, no larger than the (padded) batch.
    tb = _round_up(min(tile_b, _round_up(B, 8)), 8)
    b_pad = _round_up(B, tb)
    n_tiles = b_pad // tb

    # Pad the input to the lane-dense / tile-aligned shape expected by the kernel.
    x = jnp.zeros((b_pad, SP), jnp.float32).at[:B, :S].set(state.astype(jnp.float32))

    kernel = functools.partial(
        actor_ppo_kernel, true_b=B, tile_b=tb, need_mask=(b_pad != B))

    const = lambda p, t: (0, 0)   # weights/biases: VMEM-resident across the grid
    out = pl.pallas_call(
        kernel,
        out_shape=jax.ShapeDtypeStruct((b_pad, AP), jnp.float32),
        grid=(3, n_tiles),
        in_specs=[
            pl.BlockSpec((tb, SP), lambda p, t: (t, 0)),
            pl.BlockSpec((SP, H1P), const), pl.BlockSpec((1, H1P), const),
            pl.BlockSpec((H1P, H2P), const), pl.BlockSpec((1, H2P), const),
            pl.BlockSpec((H2P, AP), const), pl.BlockSpec((1, AP), const),
        ],
        out_specs=pl.BlockSpec((tb, AP), lambda p, t: (t, 0)),
        scratch_shapes=[
            pltpu.VMEM((1, H1P), jnp.float32),   # layer-1 sum
            pltpu.VMEM((1, H1P), jnp.float32),   # layer-1 sum of squares
            pltpu.VMEM((1, H2P), jnp.float32),   # layer-2 sum
            pltpu.VMEM((1, H2P), jnp.float32),   # layer-2 sum of squares
        ],
        compiler_params=pltpu.CompilerParams(
            # Pass axis carries the BN-stat dependency; tile axis reduces into
            # VMEM scratch, so neither can be sharded across TensorCores
            # without a cross-core statistics reduction.
            dimension_semantics=("arbitrary", "arbitrary")),
    )(x, w1, b1, w2, b2, w3, b3)

    return out[:B, :action_dim]


def init_actor_ppo_params(key, state_dim, dims, action_dim):
    """torch.nn.Linear-style init (U[-1/sqrt(fan_in), 1/sqrt(fan_in)]).

    Weights are stored pre-transposed as [in, out] and zero-padded to multiples
    of 128 in both feature dims so the kernel is lane-dense end to end."""
    layer_dims = [state_dim, *dims, action_dim]
    params = {}
    for i in range(len(layer_dims) - 1):
        d_in, d_out = layer_dims[i], layer_dims[i + 1]
        p_in, p_out = _round_up(d_in, LANE), _round_up(d_out, LANE)
        key, kw, kb = jax.random.split(key, 3)
        bound = 1.0 / (d_in ** 0.5)
        w = jax.random.uniform(kw, (d_in, d_out), jnp.float32, -bound, bound)
        b = jax.random.uniform(kb, (1, d_out), jnp.float32, -bound, bound)
        params[f"w{i+1}"] = jnp.zeros((p_in, p_out), jnp.float32).at[:d_in, :d_out].set(w)
        params[f"b{i+1}"] = jnp.zeros((1, p_out), jnp.float32).at[:, :d_out].set(b)
    # Present in the module but unused by forward().
    params["action_std_log"] = jnp.zeros((1, action_dim), jnp.float32)
    return params


def _reference_forward(state, params, state_dim, dims, action_dim):
    # Pure-JAX reference on the *unpadded* sub-blocks of the parameters,
    # using the safer two-pass variance form.
    layer_dims = [state_dim, *dims, action_dim]
    h = state
    n = len(layer_dims) - 1
    for i in range(n):
        d_in, d_out = layer_dims[i], layer_dims[i + 1]
        w = params[f"w{i+1}"][:d_in, :d_out]
        b = params[f"b{i+1}"][:, :d_out]
        h = h @ w + b
        if i < n - 1:
            mean = jnp.mean(h, axis=0, keepdims=True)
            var = jnp.mean((h - mean) ** 2, axis=0, keepdims=True)
            h = jnp.maximum((h - mean) * jax.lax.rsqrt(var + BN_EPS), 0.0)
    return jnp.tanh(h)


if __name__ == "__main__":
    batch = 512            # realistic PPO minibatch; amortizes launch/DMA overhead
    state_dim = 16
    hidden_dims = (64, 64)
    action_dim = 8

    key = jax.random.PRNGKey(0)
    key, k_state = jax.random.split(key)
    params = init_actor_ppo_params(key, state_dim, hidden_dims, action_dim)
    state = jax.random.normal(k_state, (batch, state_dim), jnp.float32)

    out = actor_ppo_forward(state, params, action_dim, tile_b=128)
    out = jax.block_until_ready(out)

    ref = _reference_forward(state, params, state_dim, hidden_dims, action_dim)
    assert out.shape == (batch, action_dim)
    assert bool(jnp.allclose(out, ref, atol=1e-4, rtol=1e-4)), (
        "max abs diff %e" % float(jnp.max(jnp.abs(out - ref))))

    print("KERNEL_OK")
</pallas_src>

<mosaic_0001>
module attributes {stable_mosaic.version = 11 : i64} {
  func.func @actor_ppo_kernel(%arg0: i32, %arg1: i32, %arg2: memref<128x128xf32, #tpu.memory_space<vmem>>, %arg3: memref<128x128xf32, #tpu.memory_space<vmem>>, %arg4: memref<1x128xf32, #tpu.memory_space<vmem>>, %arg5: memref<128x128xf32, #tpu.memory_space<vmem>>, %arg6: memref<1x128xf32, #tpu.memory_space<vmem>>, %arg7: memref<128x128xf32, #tpu.memory_space<vmem>>, %arg8: memref<1x128xf32, #tpu.memory_space<vmem>>, %arg9: memref<128x128xf32, #tpu.memory_space<vmem>>, %arg10: memref<1x128xf32, #tpu.memory_space<vmem>>, %arg11: memref<1x128xf32, #tpu.memory_space<vmem>>, %arg12: memref<1x128xf32, #tpu.memory_space<vmem>>, %arg13: memref<1x128xf32, #tpu.memory_space<vmem>>) attributes {dimension_semantics = [#tpu.dimension_semantics<arbitrary>, #tpu.dimension_semantics<arbitrary>], iteration_bounds = array<i64: 3, 4>, scalar_prefetch = 0 : i64, scratch_operands = 4 : i64, tpu.core_type = #tpu.core_type<tc>, window_params = [{transform_indices = @transform_0, window_bounds = array<i64: 128, 128>}, {pipeline_mode = #tpu.pipeline_mode<synchronous>, transform_indices = @transform_1, window_bounds = array<i64: 128, 128>}, {pipeline_mode = #tpu.pipeline_mode<synchronous>, transform_indices = @transform_2, window_bounds = array<i64: 1, 128>}, {pipeline_mode = #tpu.pipeline_mode<synchronous>, transform_indices = @transform_3, window_bounds = array<i64: 128, 128>}, {pipeline_mode = #tpu.pipeline_mode<synchronous>, transform_indices = @transform_4, window_bounds = array<i64: 1, 128>}, {pipeline_mode = #tpu.pipeline_mode<synchronous>, transform_indices = @transform_5, window_bounds = array<i64: 128, 128>}, {pipeline_mode = #tpu.pipeline_mode<synchronous>, transform_indices = @transform_6, window_bounds = array<i64: 1, 128>}, {transform_indices = @transform_7, window_bounds = array<i64: 128, 128>}]} {
    %c0 = arith.constant 0 : index
    %c0_0 = arith.constant 0 : index
    %0 = vector.load %arg2[%c0, %c0_0] : memref<128x128xf32, #tpu.memory_space<vmem>>, vector<128x128xf32>
    %c0_1 = arith.constant 0 : index
    %c0_2 = arith.constant 0 : index
    %1 = vector.load %arg3[%c0_1, %c0_2] : memref<128x128xf32, #tpu.memory_space<vmem>>, vector<128x128xf32>
    %cst = arith.constant dense<0.000000e+00> : vector<128x128xf32>
    %2 = tpu.matmul %0, %1, %cst {dimension_numbers = #tpu.dot_dimension_numbers<[1], [0], [0], [1], [0, 0, 1, 1], [], []>} : vector<128x128xf32>, vector<128x128xf32>, vector<128x128xf32> -> vector<128x128xf32>
    %c0_3 = arith.constant 0 : index
    %c0_4 = arith.constant 0 : index
    %3 = vector.load %arg4[%c0_3, %c0_4] : memref<1x128xf32, #tpu.memory_space<vmem>>, vector<1x128xf32>
    %4 = vector.broadcast %3 : vector<1x128xf32> to vector<128x128xf32>
    %5 = arith.addf %2, %4 : vector<128x128xf32>
    %c0_i32 = arith.constant 0 : i32
    %6 = arith.cmpi eq, %arg0, %c0_i32 : i32
    %7 = arith.extui %6 : i1 to i32
    %c0_i32_5 = arith.constant 0 : i32
    %8 = arith.cmpi ne, %7, %c0_i32_5 : i32
    scf.if %8 {
      %c0_i32_8 = arith.constant 0 : i32
      %15 = arith.cmpi eq, %arg1, %c0_i32_8 : i32
      %16 = arith.extui %15 : i1 to i32
      %c0_i32_9 = arith.constant 0 : i32
      %17 = arith.cmpi ne, %16, %c0_i32_9 : i32
      scf.if %17 {
        %cst_20 = arith.constant 0.000000e+00 : f32
        %29 = vector.broadcast %cst_20 : f32 to vector<1x128xf32>
        %c0_21 = arith.constant 0 : index
        %c0_22 = arith.constant 0 : index
        %30 = vector.load %arg10[%c0_21, %c0_22] : memref<1x128xf32, #tpu.memory_space<vmem>>, vector<1x128xf32>
        tpu.vector_store %arg10[%c0_21, %c0_22], %29 {strides = array<i32>} : memref<1x128xf32, #tpu.memory_space<vmem>>, vector<1x128xf32>,
        %cst_23 = arith.constant 0.000000e+00 : f32
        %31 = vector.broadcast %cst_23 : f32 to vector<1x128xf32>
        %c0_24 = arith.constant 0 : index
        %c0_25 = arith.constant 0 : index
        %32 = vector.load %arg11[%c0_24, %c0_25] : memref<1x128xf32, #tpu.memory_space<vmem>>, vector<1x128xf32>
        tpu.vector_store %arg11[%c0_24, %c0_25], %31 {strides = array<i32>} : memref<1x128xf32, #tpu.memory_space<vmem>>, vector<1x128xf32>,
      } else {
      }
      %c0_10 = arith.constant 0 : index
      %c0_11 = arith.constant 0 : index
      %18 = vector.load %arg10[%c0_10, %c0_11] : memref<1x128xf32, #tpu.memory_space<vmem>>, vector<1x128xf32>
      %cst_12 = arith.constant dense<0.000000e+00> : vector<128xf32>
      %19 = vector.multi_reduction <add>, %5, %cst_12 [0] : vector<128x128xf32> to vector<128xf32>
      %20 = vector.shape_cast %19 : vector<128xf32> to vector<1x128xf32>
      %21 = arith.addf %18, %20 : vector<1x128xf32>
      %c0_13 = arith.constant 0 : index
      %c0_14 = arith.constant 0 : index
      %22 = vector.load %arg10[%c0_13, %c0_14] : memref<1x128xf32, #tpu.memory_space<vmem>>, vector<1x128xf32>
      tpu.vector_store %arg10[%c0_13, %c0_14], %21 {strides = array<i32>} : memref<1x128xf32, #tpu.memory_space<vmem>>, vector<1x128xf32>,
      %c0_15 = arith.constant 0 : index
      %c0_16 = arith.constant 0 : index
      %23 = vector.load %arg11[%c0_15, %c0_16] : memref<1x128xf32, #tpu.memory_space<vmem>>, vector<1x128xf32>
      %24 = arith.mulf %5, %5 : vector<128x128xf32>
      %cst_17 = arith.constant dense<0.000000e+00> : vector<128xf32>
      %25 = vector.multi_reduction <add>, %24, %cst_17 [0] : vector<128x128xf32> to vector<128xf32>
      %26 = vector.shape_cast %25 : vector<128xf32> to vector<1x128xf32>
      %27 = arith.addf %23, %26 : vector<1x128xf32>
      %c0_18 = arith.constant 0 : index
      %c0_19 = arith.constant 0 : index
      %28 = vector.load %arg11[%c0_18, %c0_19] : memref<1x128xf32, #tpu.memory_space<vmem>>, vector<1x128xf32>
      tpu.vector_store %arg11[%c0_18, %c0_19], %27 {strides = array<i32>} : memref<1x128xf32, #tpu.memory_space<vmem>>, vector<1x128xf32>,
    } else {
    }
    %c1_i32 = arith.constant 1 : i32
    %9 = arith.cmpi eq, %arg0, %c1_i32 : i32
    %10 = arith.extui %9 : i1 to i32
    %c0_i32_6 = arith.constant 0 : i32
    %11 = arith.cmpi ne, %10, %c0_i32_6 : i32
    scf.if %11 {
      %c0_i32_8 = arith.constant 0 : i32
      %15 = arith.cmpi eq, %arg1, %c0_i32_8 : i32
      %16 = arith.extui %15 : i1 to i32
      %c0_i32_9 = arith.constant 0 : i32
      %17 = arith.cmpi ne, %16, %c0_i32_9 : i32
      scf.if %17 {
        %cst_34 = arith.constant 0.000000e+00 : f32
        %53 = vector.broadcast %cst_34 : f32 to vector<1x128xf32>
        %c0_35 = arith.constant 0 : index
        %c0_36 = arith.constant 0 : index
        %54 = vector.load %arg12[%c0_35, %c0_36] : memref<1x128xf32, #tpu.memory_space<vmem>>, vector<1x128xf32>
        tpu.vector_store %arg12[%c0_35, %c0_36], %53 {strides = array<i32>} : memref<1x128xf32, #tpu.memory_space<vmem>>, vector<1x128xf32>,
        %cst_37 = arith.constant 0.000000e+00 : f32
        %55 = vector.broadcast %cst_37 : f32 to vector<1x128xf32>
        %c0_38 = arith.constant 0 : index
        %c0_39 = arith.constant 0 : index
        %56 = vector.load %arg13[%c0_38, %c0_39] : memref<1x128xf32, #tpu.memory_space<vmem>>, vector<1x128xf32>
        tpu.vector_store %arg13[%c0_38, %c0_39], %55 {strides = array<i32>} : memref<1x128xf32, #tpu.memory_space<vmem>>, vector<1x128xf32>,
      } else {
      }
      %c0_10 = arith.constant 0 : index
      %c0_11 = arith.constant 0 : index
      %18 = vector.load %arg10[%c0_10, %c0_11] : memref<1x128xf32, #tpu.memory_space<vmem>>, vector<1x128xf32>
      %cst_12 = arith.constant 0.001953125 : f32
      %19 = vector.broadcast %cst_12 : f32 to vector<1x128xf32>
      %20 = arith.mulf %18, %19 : vector<1x128xf32>
      %c0_13 = arith.constant 0 : index
      %c0_14 = arith.constant 0 : index
      %21 = vector.load %arg11[%c0_13, %c0_14] : memref<1x128xf32, #tpu.memory_space<vmem>>, vector<1x128xf32>
      %cst_15 = arith.constant 0.001953125 : f32
      %22 = vector.broadcast %cst_15 : f32 to vector<1x128xf32>
      %23 = arith.mulf %21, %22 : vector<1x128xf32>
      %24 = arith.mulf %20, %20 : vector<1x128xf32>
      %25 = arith.subf %23, %24 : vector<1x128xf32>
      %cst_16 = arith.constant 0.000000e+00 : f32
      %26 = vector.broadcast %cst_16 : f32 to vector<1x128xf32>
      %27 = arith.maximumf %25, %26 : vector<1x128xf32>
      %28 = vector.broadcast %20 : vector<1x128xf32> to vector<128x128xf32>
      %29 = arith.subf %5, %28 : vector<128x128xf32>
      %cst_17 = arith.constant 9.99999974E-6 : f32
      %30 = vector.broadcast %cst_17 : f32 to vector<1x128xf32>
      %31 = arith.addf %27, %30 : vector<1x128xf32>
      %32 = math.rsqrt %31 : vector<1x128xf32>
      %33 = vector.broadcast %32 : vector<1x128xf32> to vector<128x128xf32>
      %34 = arith.mulf %29, %33 : vector<128x128xf32>
      %cst_18 = arith.constant 0.000000e+00 : f32
      %35 = vector.broadcast %cst_18 : f32 to vector<128x128xf32>
      %36 = arith.maximumf %34, %35 : vector<128x128xf32>
      %c0_19 = arith.constant 0 : index
      %c0_20 = arith.constant 0 : index
      %37 = vector.load %arg5[%c0_19, %c0_20] : memref<128x128xf32, #tpu.memory_space<vmem>>, vector<128x128xf32>
      %cst_21 = arith.constant dense<0.000000e+00> : vector<128x128xf32>
      %38 = tpu.matmul %36, %37, %cst_21 {dimension_numbers = #tpu.dot_dimension_numbers<[1], [0], [0], [1], [0, 0, 1, 1], [], []>} : vector<128x128xf32>, vector<128x128xf32>, vector<128x128xf32> -> vector<128x128xf32>
      %c0_22 = arith.constant 0 : index
      %c0_23 = arith.constant 0 : index
      %39 = vector.load %arg6[%c0_22, %c0_23] : memref<1x128xf32, #tpu.memory_space<vmem>>, vector<1x128xf32>
      %40 = vector.broadcast %39 : vector<1x128xf32> to vector<128x128xf32>
      %41 = arith.addf %38, %40 : vector<128x128xf32>
      %c0_24 = arith.constant 0 : index
      %c0_25 = arith.constant 0 : index
      %42 = vector.load %arg12[%c0_24, %c0_25] : memref<1x128xf32, #tpu.memory_space<vmem>>, vector<1x128xf32>
      %cst_26 = arith.constant dense<0.000000e+00> : vector<128xf32>
      %43 = vector.multi_reduction <add>, %41, %cst_26 [0] : vector<128x128xf32> to vector<128xf32>
      %44 = vector.shape_cast %43 : vector<128xf32> to vector<1x128xf32>
      %45 = arith.addf %42, %44 : vector<1x128xf32>
      %c0_27 = arith.constant 0 : index
      %c0_28 = arith.constant 0 : index
      %46 = vector.load %arg12[%c0_27, %c0_28] : memref<1x128xf32, #tpu.memory_space<vmem>>, vector<1x128xf32>
      tpu.vector_store %arg12[%c0_27, %c0_28], %45 {strides = array<i32>} : memref<1x128xf32, #tpu.memory_space<vmem>>, vector<1x128xf32>,
      %c0_29 = arith.constant 0 : index
      %c0_30 = arith.constant 0 : index
      %47 = vector.load %arg13[%c0_29, %c0_30] : memref<1x128xf32, #tpu.memory_space<vmem>>, vector<1x128xf32>
      %48 = arith.mulf %41, %41 : vector<128x128xf32>
      %cst_31 = arith.constant dense<0.000000e+00> : vector<128xf32>
      %49 = vector.multi_reduction <add>, %48, %cst_31 [0] : vector<128x128xf32> to vector<128xf32>
      %50 = vector.shape_cast %49 : vector<128xf32> to vector<1x128xf32>
      %51 = arith.addf %47, %50 : vector<1x128xf32>
      %c0_32 = arith.constant 0 : index
      %c0_33 = arith.constant 0 : index
      %52 = vector.load %arg13[%c0_32, %c0_33] : memref<1x128xf32, #tpu.memory_space<vmem>>, vector<1x128xf32>
      tpu.vector_store %arg13[%c0_32, %c0_33], %51 {strides = array<i32>} : memref<1x128xf32, #tpu.memory_space<vmem>>, vector<1x128xf32>,
    } else {
    }
    %c2_i32 = arith.constant 2 : i32
    %12 = arith.cmpi eq, %arg0, %c2_i32 : i32
    %13 = arith.extui %12 : i1 to i32
    %c0_i32_7 = arith.constant 0 : i32
    %14 = arith.cmpi ne, %13, %c0_i32_7 : i32
    scf.if %14 {
      %c0_8 = arith.constant 0 : index
      %c0_9 = arith.constant 0 : index
      %15 = vector.load %arg10[%c0_8, %c0_9] : memref<1x128xf32, #tpu.memory_space<vmem>>, vector<1x128xf32>
      %cst_10 = arith.constant 0.001953125 : f32
      %16 = vector.broadcast %cst_10 : f32 to vector<1x128xf32>
      %17 = arith.mulf %15, %16 : vector<1x128xf32>
      %c0_11 = arith.constant 0 : index
      %c0_12 = arith.constant 0 : index
      %18 = vector.load %arg11[%c0_11, %c0_12] : memref<1x128xf32, #tpu.memory_space<vmem>>, vector<1x128xf32>
      %cst_13 = arith.constant 0.001953125 : f32
      %19 = vector.broadcast %cst_13 : f32 to vector<1x128xf32>
      %20 = arith.mulf %18, %19 : vector<1x128xf32>
      %21 = arith.mulf %17, %17 : vector<1x128xf32>
      %22 = arith.subf %20, %21 : vector<1x128xf32>
      %cst_14 = arith.constant 0.000000e+00 : f32
      %23 = vector.broadcast %cst_14 : f32 to vector<1x128xf32>
      %24 = arith.maximumf %22, %23 : vector<1x128xf32>
      %25 = vector.broadcast %17 : vector<1x128xf32> to vector<128x128xf32>
      %26 = arith.subf %5, %25 : vector<128x128xf32>
      %cst_15 = arith.constant 9.99999974E-6 : f32
      %27 = vector.broadcast %cst_15 : f32 to vector<1x128xf32>
      %28 = arith.addf %24, %27 : vector<1x128xf32>
      %29 = math.rsqrt %28 : vector<1x128xf32>
      %30 = vector.broadcast %29 : vector<1x128xf32> to vector<128x128xf32>
      %31 = arith.mulf %26, %30 : vector<128x128xf32>
      %cst_16 = arith.constant 0.000000e+00 : f32
      %32 = vector.broadcast %cst_16 : f32 to vector<128x128xf32>
      %33 = arith.maximumf %31, %32 : vector<128x128xf32>
      %c0_17 = arith.constant 0 : index
      %c0_18 = arith.constant 0 : index
      %34 = vector.load %arg5[%c0_17, %c0_18] : memref<128x128xf32, #tpu.memory_space<vmem>>, vector<128x128xf32>
      %cst_19 = arith.constant dense<0.000000e+00> : vector<128x128xf32>
      %35 = tpu.matmul %33, %34, %cst_19 {dimension_numbers = #tpu.dot_dimension_numbers<[1], [0], [0], [1], [0, 0, 1, 1], [], []>} : vector<128x128xf32>, vector<128x128xf32>, vector<128x128xf32> -> vector<128x128xf32>
      %c0_20 = arith.constant 0 : index
      %c0_21 = arith.constant 0 : index
      %36 = vector.load %arg6[%c0_20, %c0_21] : memref<1x128xf32, #tpu.memory_space<vmem>>, vector<1x128xf32>
      %37 = vector.broadcast %36 : vector<1x128xf32> to vector<128x128xf32>
      %38 = arith.addf %35, %37 : vector<128x128xf32>
      %c0_22 = arith.constant 0 : index
      %c0_23 = arith.constant 0 : index
      %39 = vector.load %arg12[%c0_22, %c0_23] : memref<1x128xf32, #tpu.memory_space<vmem>>, vector<1x128xf32>
      %cst_24 = arith.constant 0.001953125 : f32
      %40 = vector.broadcast %cst_24 : f32 to vector<1x128xf32>
      %41 = arith.mulf %39, %40 : vector<1x128xf32>
      %c0_25 = arith.constant 0 : index
      %c0_26 = arith.constant 0 : index
      %42 = vector.load %arg13[%c0_25, %c0_26] : memref<1x128xf32, #tpu.memory_space<vmem>>, vector<1x128xf32>
      %cst_27 = arith.constant 0.001953125 : f32
      %43 = vector.broadcast %cst_27 : f32 to vector<1x128xf32>
      %44 = arith.mulf %42, %43 : vector<1x128xf32>
      %45 = arith.mulf %41, %41 : vector<1x128xf32>
      %46 = arith.subf %44, %45 : vector<1x128xf32>
      %cst_28 = arith.constant 0.000000e+00 : f32
      %47 = vector.broadcast %cst_28 : f32 to vector<1x128xf32>
      %48 = arith.maximumf %46, %47 : vector<1x128xf32>
      %49 = vector.broadcast %41 : vector<1x128xf32> to vector<128x128xf32>
      %50 = arith.subf %38, %49 : vector<128x128xf32>
      %cst_29 = arith.constant 9.99999974E-6 : f32
      %51 = vector.broadcast %cst_29 : f32 to vector<1x128xf32>
      %52 = arith.addf %48, %51 : vector<1x128xf32>
      %53 = math.rsqrt %52 : vector<1x128xf32>
      %54 = vector.broadcast %53 : vector<1x128xf32> to vector<128x128xf32>
      %55 = arith.mulf %50, %54 : vector<128x128xf32>
      %cst_30 = arith.constant 0.000000e+00 : f32
      %56 = vector.broadcast %cst_30 : f32 to vector<128x128xf32>
      %57 = arith.maximumf %55, %56 : vector<128x128xf32>
      %c0_31 = arith.constant 0 : index
      %c0_32 = arith.constant 0 : index
      %58 = vector.load %arg7[%c0_31, %c0_32] : memref<128x128xf32, #tpu.memory_space<vmem>>, vector<128x128xf32>
      %cst_33 = arith.constant dense<0.000000e+00> : vector<128x128xf32>
      %59 = tpu.matmul %57, %58, %cst_33 {dimension_numbers = #tpu.dot_dimension_numbers<[1], [0], [0], [1], [0, 0, 1, 1], [], []>} : vector<128x128xf32>, vector<128x128xf32>, vector<128x128xf32> -> vector<128x128xf32>
      %c0_34 = arith.constant 0 : index
      %c0_35 = arith.constant 0 : index
      %60 = vector.load %arg8[%c0_34, %c0_35] : memref<1x128xf32, #tpu.memory_space<vmem>>, vector<1x128xf32>
      %61 = vector.broadcast %60 : vector<1x128xf32> to vector<128x128xf32>
      %62 = arith.addf %59, %61 : vector<128x128xf32>
      %63 = math.tanh %62 : vector<128x128xf32>
      %c0_36 = arith.constant 0 : index
      %c0_37 = arith.constant 0 : index
      %64 = vector.load %arg9[%c0_36, %c0_37] : memref<128x128xf32, #tpu.memory_space<vmem>>, vector<128x128xf32>
      tpu.vector_store %arg9[%c0_36, %c0_37], %63 {strides = array<i32>} : memref<128x128xf32, #tpu.memory_space<vmem>>, vector<128x128xf32>,
    } else {
    }
    return
  }
  func.func @transform_0(%arg0: i32, %arg1: i32) -> (i32, i32) {
    %c0_i32 = arith.constant 0 : i32
    %c0_i32_0 = arith.constant 0 : i32
    return %arg1, %c0_i32 : i32, i32
  }
  func.func @transform_1(%arg0: i32, %arg1: i32) -> (i32, i32) {
    %c0_i32 = arith.constant 0 : i32
    %c0_i32_0 = arith.constant 0 : i32
    %c0_i32_1 = arith.constant 0 : i32
    return %c0_i32, %c0_i32_0 : i32, i32
  }
  func.func @transform_2(%arg0: i32, %arg1: i32) -> (i32, i32) {
    %c0_i32 = arith.constant 0 : i32
    %c0_i32_0 = arith.constant 0 : i32
    %c0_i32_1 = arith.constant 0 : i32
    return %c0_i32, %c0_i32_0 : i32, i32
  }
  func.func @transform_3(%arg0: i32, %arg1: i32) -> (i32, i32) {
    %c0_i32 = arith.constant 0 : i32
    %c0_i32_0 = arith.constant 0 : i32
    %c0_i32_1 = arith.constant 0 : i32
    return %c0_i32, %c0_i32_0 : i32, i32
  }
  func.func @transform_4(%arg0: i32, %arg1: i32) -> (i32, i32) {
    %c0_i32 = arith.constant 0 : i32
    %c0_i32_0 = arith.constant 0 : i32
    %c0_i32_1 = arith.constant 0 : i32
    return %c0_i32, %c0_i32_0 : i32, i32
  }
  func.func @transform_5(%arg0: i32, %arg1: i32) -> (i32, i32) {
    %c0_i32 = arith.constant 0 : i32
    %c0_i32_0 = arith.constant 0 : i32
    %c0_i32_1 = arith.constant 0 : i32
    return %c0_i32, %c0_i32_0 : i32, i32
  }
  func.func @transform_6(%arg0: i32, %arg1: i32) -> (i32, i32) {
    %c0_i32 = arith.constant 0 : i32
    %c0_i32_0 = arith.constant 0 : i32
    %c0_i32_1 = arith.constant 0 : i32
    return %c0_i32, %c0_i32_0 : i32, i32
  }
  func.func @transform_7(%arg0: i32, %arg1: i32) -> (i32, i32) {
    %c0_i32 = arith.constant 0 : i32
    %c0_i32_0 = arith.constant 0 : i32
    return %arg1, %c0_i32 : i32, i32
  }
}

</mosaic_0001>

<bundles_post_ra>
// kernel: tpu_custom_call.1
= control target key start
LH: loop header
LB: loop body
LE: loop exit
PB: predicated region body
PF: predicated region fallthrough
CT: control target
= control target key end

     0   :  { %s3141_s0 = inlined_call_operand.hbm [shape: f32[512,128], index: 0, kind: input, shape index: {}]   ;;  %s3142_s1 = inlined_call_operand.hbm [shape: f32[128,128], index: 1, kind: input, shape index: {}]   ;;  %s3143_s2 = inlined_call_operand.vmem [shape: f32[1,128], index: 2, kind: input, shape index: {}]   ;;  %s3144_s3 = inlined_call_operand.hbm [shape: f32[128,128], index: 3, kind: input, shape index: {}]   ;;  %s3145_s4 = inlined_call_operand.vmem [shape: f32[1,128], index: 4, kind: input, shape index: {}]   ;;  %s3146_s5 = inlined_call_operand.hbm [shape: f32[128,128], index: 5, kind: input, shape index: {}]   ;;  %s3147_s6 = inlined_call_operand.vmem [shape: f32[1,128], index: 6, kind: input, shape index: {}]   ;;  %s3148_s7 = inlined_call_operand.hbm [shape: f32[512,128], index: 7, kind: output, shape index: {}]  }
   0x1   :  { %3156 = sst [smem:[#allocation22_spill]] %s3145_s4 }
   0x2   :  { %3157 = sst [smem:[#allocation23_spill]] %s3147_s6 }
   0x3   :  { %3158 = sst [smem:[#allocation24_spill]] %s3148_s7 }
   0x4   :  { %12 = vsyncpa [#allocation7], 0 }
   0x5   :  { %14 = vsyncpa [#allocation7 + $0x1], 0 }
   0x6   :  { %15 = vsyncpa [#allocation10], 0 }
   0x7   :  { %16 = vsyncpa [#allocation13], 0 }
   0x8   :  { %17 = vsyncpa [#allocation8], 0 }
   0x9   :  { %19 = vsyncpa [#allocation8 + $0x1], 0  ;;  %s2531_s24 = smov 0   ;;  %s2533_s25 = smov 0  }
   0xa   :  { %s2535_s26 = smov 0   ;;  %s2537_s27 = smov 0  }
   0xb   :  { %s2539_s28 = smov 0   ;;  %s2541_s29 = smov 0  }
   0xc   :  { %s2543_s30 = smov 0   ;;  %s2545_s8 = smov 0  }
   0xd LB: > { %3159 = sst [smem:[#allocation19_spill]] %s2450_s24  ;;  %s1561_s9 = sadd.s32 4294967295, %s2478_s8   ;;  %s2478_s8 = sphi %s2545_s8, %s25_s8   ;;  %s2474_s30 = sphi %s2543_s30, %s3192_s30   ;;  %s2470_s29 = sphi %s2541_s29, %s3191_s29   ;;  %s2466_s28 = sphi %s2539_s28, %s3190_s28   ;;  %s2462_s27 = sphi %s2537_s27, %s3189_s27   ;;  %s2458_s26 = sphi %s2535_s26, %s3188_s26   ;;  %s2454_s25 = sphi %s2533_s25, %s3187_s25   ;;  %s2450_s24 = sphi %s2531_s24, %s3186_s24  }
   0xe   : > { %3160 = sst [smem:[#allocation20_spill]] %s2462_s27  ;;  %s1562_s10 = sadd.s32 4294967294, %s2478_s8  }
   0xf   : > { %p57_p0 = scmp.ne.s32.totalorder %s2454_s25, %s2450_s24  ;;  %p2575_p1 = scmp.eq.s32.totalorder %s1561_s9, 0 }
  0x10   : > { %p2579_p2 = scmp.eq.s32.totalorder %s1561_s9, 11  ;;  %p213_p3 = scmp.eq.s32.totalorder %s1562_s10, 11 }
  0x11   : > { %s3161_s11 = scalar_select %p2575_p1, 1, 0 }
  0x12   : > { %s3162_s12 = scalar_select %p2579_p2, 1, 0 }
  0x13   : > { %p2585_p4 = por %p2575_p1, %p57_p0  ;;  %p1563_p5 = scmp.ge.s32.totalorder %s2478_s8, 1 }
  0x14   : > { %p2590_p6 = por %p213_p3, %p57_p0  ;;  %p220_p7 = scmp.lt.s32.totalorder %s2478_s8, 13 }
  0x15   : > { %s3163_s13 = scalar_select %p2585_p4, 1, 0 }
  0x16   : > { %s3164_s14 = scalar_select %p2590_p6, 1, 0 }
  0x17   : > { %p2595_p8 = pnand %p1563_p5, %p220_p7  ;;  %s2480_s16 = smov [#allocation9]  }
  0x18   : > { %3165 = sst [smem:[#allocation21_spill]] %s3164_s14  ;;  %s232_s17 = sshll.u32 %s2480_s16, 4  ;;  %s2599_s17 = int_to_ptr.vmem [resolvable:$true] %s232_s17 }
  0x19   : > { %s3166_s15 = scalar_select %p2595_p8, 1, 0 }
  0x1a   : > { %p2121_p9 = pneg %p2595_p8  ;;  %s2481_s19 = smov [#allocation11]  }
  0x1b   : > { %s248_s20 = sshll.u32 %s2481_s19, 4  ;;  %s2482_s21 = smov [#allocation12]   ;;  %s2609_s20 = int_to_ptr.vmem [resolvable:$true] %s248_s20 }
  0x1c   : > { %p2605_p10 = pnand %p2121_p9, %p2575_p1  ;;  %s2611_s22 = sshll.u32 %s2482_s21, 4  ;;  %s265_s22 = int_to_ptr.vmem [resolvable:$true] %s2611_s22 }
  0x1d   : > { %s2258_s10 = scalar_lea.hbm %s3142_s1, 2048 }
  0x1e   : > { %p2259_p11 = scmp.ne.s32.totalorder %s3142_s1, %s2258_s10  ;;  %p2621_p12 = pneg %p2605_p10 }
  0x1f   : > { %p2265_p3 = scmp.lt.u32.totalorder %s2258_s10, %s3142_s1 }
  0x20   : > { %p2261_p13 = pnand %p2621_p12, %p2259_p11 }
  0x22   : > { %p2262_p0 = pneg %p2261_p13 }
  0x24   : > { %p2267_p5 = pnand %p2265_p3, %p2262_p0 }
  0x26   : > { %2270 = shalt.err (!%p2267_p5)
}
  0x27   : > { %s2271_s14 = scalar_lea.vmem %s2599_s17, 2048  ;;  %p2279_p1 = scmp.lt.s32.totalorder %s2599_s17, %s2599_s17 }
  0x28   : > { %p2272_p7 = scmp.ne.s32.totalorder %s2599_s17, %s2271_s14  ;;  %p2280_p4 = scmp.lt.s32.totalorder %s2271_s14, %s2271_s14 }
  0x2a   : > { %p2274_p9 = pnand %p2272_p7, %p2621_p12  ;;  %p2281_p11 = por %p2280_p4, %p2279_p1 }
  0x2c   : > { %p2275_p6 = pneg %p2274_p9 }
  0x2e   : > { %p2282_p13 = pnand %p2281_p11, %p2275_p6 }
  0x30   : > { %2285 = shalt.err (!%p2282_p13)
}
  0x31   : > { %s2483_s23 = smov 128   ;;  %s2484_s9 = smov 8  }
  0x32   : > { %2124 = dma.hbm_to_vmem [thread:$0]  (!%p2605_p10), %s3142_s1, 2048, %s2599_s17, [#allocation10], %s2483_s23, %s2483_s23, %s2484_s9  }
  0x33   : > { %s2286_s14 = scalar_lea.hbm %s3144_s3, 2048 }
  0x34   : > { %p2287_p1 = scmp.ne.s32.totalorder %s3144_s3, %s2286_s14  ;;  %p2293_p0 = scmp.lt.u32.totalorder %s2286_s14, %s3144_s3 }
  0x36   : > { %p2289_p4 = pnand %p2287_p1, %p2621_p12 }
  0x38   : > { %p2290_p6 = pneg %p2289_p4 }
  0x3a   : > { %p2295_p3 = pnand %p2293_p0, %p2290_p6 }
  0x3c   : > { %2298 = shalt.err (!%p2295_p3)
}
  0x3d   : > { %s2299_s17 = scalar_lea.vmem %s2609_s20, 2048  ;;  %p2307_p11 = scmp.lt.s32.totalorder %s2609_s20, %s2609_s20 }
  0x3e   : > { %p2300_p5 = scmp.ne.s32.totalorder %s2609_s20, %s2299_s17  ;;  %p2308_p13 = scmp.lt.s32.totalorder %s2299_s17, %s2299_s17 }
  0x40   : > { %p2302_p7 = pnand %p2300_p5, %p2621_p12  ;;  %p2309_p1 = por %p2308_p13, %p2307_p11 }
  0x42   : > { %p2303_p9 = pneg %p2302_p7 }
  0x44   : > { %p2310_p4 = pnand %p2309_p1, %p2303_p9 }
  0x46   : > { %2313 = shalt.err (!%p2310_p4)
}
  0x47   : > { %2127 = dma.hbm_to_vmem [thread:$0]  (!%p2605_p10), %s3144_s3, 2048, %s2609_s20, [#allocation10], %s2483_s23, %s2483_s23, %s2484_s9  }
  0x48   : > { %s2314_s10 = scalar_lea.hbm %s3146_s5, 2048 }
  0x49   : > { %p2315_p6 = scmp.ne.s32.totalorder %s3146_s5, %s2314_s10  ;;  %p2321_p5 = scmp.lt.u32.totalorder %s2314_s10, %s3146_s5 }
  0x4b   : > { %p2317_p0 = pnand %p2315_p6, %p2621_p12 }
  0x4d   : > { %p2318_p3 = pneg %p2317_p0 }
  0x4f   : > { %p2323_p7 = pnand %p2321_p5, %p2318_p3 }
  0x51   : > { %2326 = shalt.err (!%p2323_p7)
}
  0x52   : > { %s2327_s17 = scalar_lea.vmem %s265_s22, 2048  ;;  %p2335_p1 = scmp.lt.s32.totalorder %s265_s22, %s265_s22 }
  0x53   : > { %p2328_p9 = scmp.ne.s32.totalorder %s265_s22, %s2327_s17  ;;  %p2336_p4 = scmp.lt.s32.totalorder %s2327_s17, %s2327_s17 }
  0x55   : > { %p2330_p11 = pnand %p2328_p9, %p2621_p12  ;;  %p2337_p8 = por %p2336_p4, %p2335_p1 }
  0x57   : > { %p2331_p13 = pneg %p2330_p11 }
  0x59   : > { %p2338_p2 = pnand %p2337_p8, %p2331_p13 }
  0x5b   : > { %2341 = shalt.err (!%p2338_p2)
}
  0x5c   : > { %2130 = dma.hbm_to_vmem [thread:$0]  (!%p2605_p10), %s3146_s5, 2048, %s265_s22, [#allocation13], %s2483_s23, %s2483_s23, %s2484_s9  }
  0x5d   : > { %s34_s24 = sadd.s32 1, %s2470_s29  ;;  %s37_s18 = sadd.s32 1, %s2474_s30 }
  0x5e   : > { %p35_p2 = scmp.ge.s32.totalorder %s34_s24, 4  ;;  %s44_s6 = sadd.s32 1, %s2458_s26 }
  0x5f   : > { %p51_p8 = scmp.ne.s32.totalorder %s2458_s26, %s2454_s25  ;;  %p52_p12 = scmp.eq.s32.totalorder %s2478_s8, 0 }
  0x60   : > { %s3194_s24 = smov (%p35_p2, %s34_s24), 0  ;;  %s3196_s18 = smov (!%p35_p2, %s37_s18), %s2474_s30 }
  0x61   : > { %s41_s7 = ssub.s32 %s2470_s29, %s3194_s24  ;;  %p39_p6 = scmp.ge.s32.totalorder %s3196_s18, 3 }
  0x62   : > { %p42_p0 = scmp.eq.s32.totalorder %s41_s7, 0  ;;  %p53_p3 = por %p52_p12, %p51_p8 }
  0x63   : > { %p3169_p5 = scmp.ne.s32.totalorder %s3162_s12, 0  ;;  %s3198_s18 = smov (%p39_p6, %s3196_s18), 0 }
  0x64   : > { %s2713_s27 = scalar_select %p42_p0, %s2458_s26, %s44_s6  }
  0x65   : > { %p2706_p7 = por %p3169_p5, %p51_p8  ;;  %p2142_p10 = scmp.lt.s32.totalorder %s2478_s8, 12 }
  0x66   : > { %s281_s10 = sand.u32 1, %s2458_s26   ;;  %s1591_s19 = sshll.u32 %s2470_s29, 11 }
  0x67   : > { %s1568_s16 = sshll.u32 %s281_s10, 7  ;;  %s2721_s17 = scalar_lea.hbm %s3141_s0, %s1591_s19 }
  0x68   : > { %s285_s12 = scalar_lea.vmem [#allocation6], %s1568_s16  ;;  %p2725_p9 = pnand %p2142_p10, %p53_p3 }
  0x69   : > { %s292_s20 = sshll.u32 %s285_s12, 4  ;;  %s2729_s6 = scalar_lea.sflag [#allocation7], %s281_s10  ;;  %s2723_s20 = int_to_ptr.vmem [resolvable:$true] %s292_s20 }
  0x6a   : > { %s2342_s7 = scalar_lea.hbm %s2721_s17, 2048  ;;  %p2344_p13 = pneg %p2725_p9 }
  0x6b   : > { %p2343_p11 = scmp.ne.s32.totalorder %s2721_s17, %s2342_s7  ;;  %s2347_s21 = scalar_lea.hbm %s3141_s0, 8192 }
  0x6c   : > { %p2348_p2 = scmp.lt.u32.totalorder %s2721_s17, %s3141_s0  ;;  %p2349_p8 = scmp.lt.u32.totalorder %s2347_s21, %s2342_s7 }
  0x6d   : > { %p2345_p1 = pnand %p2344_p13, %p2343_p11  ;;  %p2351_p6 = scmp.lt.u32.totalorder %s2342_s7, %s2721_s17 }
  0x6e   : > { %p2350_p12 = por %p2349_p8, %p2348_p2 }
  0x6f   : > { %p2346_p4 = pneg %p2345_p1 }
  0x70   : > { %p2352_p0 = por %p2351_p6, %p2350_p12 }
  0x72   : > { %p2353_p3 = pnand %p2352_p0, %p2346_p4 }
  0x74   : > { %2356 = shalt.err (!%p2353_p3)
}
  0x75   : > { %s2357_s10 = scalar_lea.vmem %s2723_s20, 2048  ;;  %s2485_s16 = smov [#allocation6]  }
  0x76   : > { %p2358_p5 = scmp.ne.s32.totalorder %s2723_s20, %s2357_s10  ;;  %s2362_s19 = sshll.u32 %s2485_s16, 4  ;;  %s2363_s19 = int_to_ptr.vmem [resolvable:$false] %s2362_s19 }
  0x77   : > { %s2364_s14 = scalar_lea.vmem %s2363_s19, 4096  ;;  %p2365_p1 = scmp.lt.s32.totalorder %s2723_s20, %s2363_s19 }
  0x78   : > { %p2360_p10 = pnand %p2358_p5, %p2344_p13  ;;  %p2366_p2 = scmp.lt.s32.totalorder %s2364_s14, %s2357_s10 }
  0x7a   : > { %p2361_p11 = pneg %p2360_p10  ;;  %p2367_p8 = por %p2366_p2, %p2365_p1 }
  0x7c   : > { %p2368_p12 = pnand %p2367_p8, %p2361_p11 }
  0x7e   : > { %2371 = shalt.err (!%p2368_p12)
}
  0x7f   : > { %2134 = dma.hbm_to_vmem [thread:$0]  (!%p2725_p9), %s2721_s17, 2048, %s2723_s20, %s2729_s6, %s2483_s23, %s2483_s23, %s2484_s9  }
  0x80   : > { %p3172_p13 = scmp.ne.s32.totalorder %s3166_s15, 0 }
  0x81   : > { %s2763_s7 = sand.u32 (!%p3172_p13), 1, %s2454_s25   ;;  %p3173_p4 = scmp.ne.s32.totalorder (!%p3172_p13), %s3163_s13, 0 }
  0x82   : > { %304 = sbr.rel (%p3172_p13) target bundleno = 1312 (0x520), region = 48  ;;  %s1572_s21 = sshll.u32 (!%p3172_p13), %s2763_s7, 7 }
  0x83   : > { %s307_s12 = scalar_lea.sflag (!%p3172_p13), [#allocation7], %s2763_s7  ;;  %s2769_s4 = scalar_lea.vmem (!%p3172_p13), [#allocation6], %s1572_s21 }
  0x89   : > { %2433 = dma.done.wait (%p3173_p4), %s307_s12, 2048  }
  0x8a   : > { %2435 = vsyncadd (%p3173_p4), %s307_s12, 4294965248  ;;  %p3174_p9 = scmp.ne.s32.totalorder %s3161_s11, 0 }
  0x8c   : > { %2437 = dma.done.wait (%p3174_p9), [#allocation10], 4096  }
  0x8d   : > { %2439 = vsyncadd (%p3174_p9), [#allocation10], 4294963200 }
  0x8e   : > { %2441 = dma.done.wait (%p3174_p9), [#allocation13], 2048  }
  0x8f   : > { %2443 = vsyncadd (%p3174_p9), [#allocation13], 4294965248  ;;  %v371_v0 = vld [vmem:[#allocation9] sm:$0xff]  ;;  %v372_v1 = vld [vmem:[#allocation9 + $0x8] sm:$0xff]  ;;  %s2836_s15 = scalar_lea.vmem [#allocation14], %s1572_s21  ;;  %p1578_p6 = scmp.ne.s32.totalorder %s2466_s28, 0 }
  0x90   : > { %v373_v2 = vld [vmem:[#allocation9 + $0x10] sm:$0xff]  ;;  %v1945_v3 = vpack.c.bf16 %v372_v1, %v371_v0  ;;  %v374_v4 = vld [vmem:[#allocation9 + $0x18] sm:$0xff]  ;;  %v375_v6 = vld [vmem:[#allocation9 + $0x20] sm:$0xff]  ;;  %s3175_s23 = sld [smem:[#allocation20_spill]] (!%p1578_p6) }
  0x91   : > { %v1949_v5 = vpack.c.bf16 %v374_v4, %v373_v2  ;;  %v376_v7 = vld [vmem:[#allocation9 + $0x28] sm:$0xff]  ;;  %v355_v9 = vld [vmem:[%s2769_s4] sm:$0xff]  ;;  %v377_v11 = vld [vmem:[#allocation9 + $0x30] sm:$0xff] }
  0x92   : > { %1946 = vmatprep.subr.bf16.mxu0 %v1945_v3  ;;  %2073 = vmatprep.subr.bf16.mxu1 %v1945_v3  ;;  %v1953_v8 = vpack.c.bf16 %v376_v7, %v375_v6  ;;  %v363_v10 = vld [vmem:[%s2769_s4 + $0x40] sm:$0xff]  ;;  %v378_v12 = vld [vmem:[#allocation9 + $0x38] sm:$0xff]  ;;  %v380_v15 = vld [vmem:[#allocation9 + $0x48] sm:$0xff] }
  0x93   : > { %1948 = vmatpush3.bf16.msra.mxu0 %v1945_v3  ;;  %2081 = vmatpush3.bf16.msra.mxu1 %v1945_v3  ;;  %v1957_v13 = vpack.c.bf16 %v378_v12, %v377_v11  ;;  %v379_v14 = vld [vmem:[#allocation9 + $0x40] sm:$0xff]  ;;  %v381_v17 = vld [vmem:[#allocation9 + $0x50] sm:$0xff]  ;;  %v382_v18 = vld [vmem:[#allocation9 + $0x58] sm:$0xff] }
  0x94   : > { %1950 = vmatprep.subr.bf16.mxu0 %v1949_v5  ;;  %2074 = vmatprep.subr.bf16.mxu1 %v1949_v5  ;;  %v1961_v16 = vpack.c.bf16 %v380_v15, %v379_v14  ;;  %v1965_v19 = vpack.c.bf16 %v382_v18, %v381_v17  ;;  %v383_v20 = vld [vmem:[#allocation9 + $0x60] sm:$0xff]  ;;  %v384_v21 = vld [vmem:[#allocation9 + $0x68] sm:$0xff]  ;;  %v385_v23 = vld [vmem:[#allocation9 + $0x70] sm:$0xff] }
  0x95   : > { %1753 = vmatprep.mubr.f32.mxu0 %v355_v9  ;;  %1765 = vmatprep.mubr.f32.mxu1 %v363_v10  ;;  %v1969_v22 = vpack.c.bf16 %v384_v21, %v383_v20  ;;  %v386_v24 = vld [vmem:[#allocation9 + $0x78] sm:$0xff]  ;;  %v356_v26 = vld [vmem:[%s2769_s4 + $0x8] sm:$0xff]  ;;  %v357_v28 = vld [vmem:[%s2769_s4 + $0x10] sm:$0xff] }
  0x96   : > { %v1973_v25 = vpack.c.bf16 %v386_v24, %v385_v23  ;;  %v364_v27 = vld [vmem:[%s2769_s4 + $0x48] sm:$0xff]  ;;  %v365_v29 = vld [vmem:[%s2769_s4 + $0x50] sm:$0xff]  ;;  %v358_v30 = vld [vmem:[%s2769_s4 + $0x18] sm:$0xff]  ;;  %p1579_p0 = scmp.ne.s32.totalorder (!%p1578_p6), %s3175_s23, 0 }
  0x97   : > { %1952 = vmatpush3.bf16.msra.mxu0 %v1949_v5  ;;  %2082 = vmatpush3.bf16.msra.mxu1 %v1949_v5  ;;  %v366_v31 = vld [vmem:[%s2769_s4 + $0x58] sm:$0xff]  ;;  %v359_v32 = vld [vmem:[%s2769_s4 + $0x20] sm:$0xff]  ;;  %v360_v34 = vld [vmem:[%s2769_s4 + $0x28] sm:$0xff] }
  0x98   : > { %1954 = vmatprep.subr.bf16.mxu0 %v1953_v8  ;;  %2075 = vmatprep.subr.bf16.mxu1 %v1953_v8  ;;  %v367_v33 = vld [vmem:[%s2769_s4 + $0x60] sm:$0xff]  ;;  %v368_v35 = vld [vmem:[%s2769_s4 + $0x68] sm:$0xff]  ;;  %v361_v36 = vld [vmem:[%s2769_s4 + $0x30] sm:$0xff] }
  0x99   : > { %v369_v37 = vld [vmem:[%s2769_s4 + $0x70] sm:$0xff]  ;;  %v362_v38 = vld [vmem:[%s2769_s4 + $0x38] sm:$0xff] }
  0x9a   : > { %v370_v39 = vld [vmem:[%s2769_s4 + $0x78] sm:$0xff] }
  0x9b   : > { %1956 = vmatpush3.bf16.msra.mxu0 %v1953_v8  ;;  %2083 = vmatpush3.bf16.msra.mxu1 %v1953_v8  ;;  %v1577_v40 = vld [vmem:[%s3143_s2] ss:$0 sm:$0xff] }
  0x9c   : > { %1958 = vmatprep.subr.bf16.mxu0 %v1957_v13  ;;  %2076 = vmatprep.subr.bf16.mxu1 %v1957_v13 }
  0x9f   : > { %1960 = vmatpush3.bf16.msra.mxu0 %v1957_v13  ;;  %2084 = vmatpush3.bf16.msra.mxu1 %v1957_v13 }
  0xa0   : > { %1962 = vmatprep.subr.bf16.mxu0 %v1961_v16  ;;  %2077 = vmatprep.subr.bf16.mxu1 %v1961_v16 }
  0xa3   : > { %1964 = vmatpush3.bf16.msra.mxu0 %v1961_v16  ;;  %2085 = vmatpush3.bf16.msra.mxu1 %v1961_v16 }
  0xa4   : > { %1966 = vmatprep.subr.bf16.mxu0 %v1965_v19  ;;  %2078 = vmatprep.subr.bf16.mxu1 %v1965_v19 }
  0xa7   : > { %1968 = vmatpush3.bf16.msra.mxu0 %v1965_v19  ;;  %2086 = vmatpush3.bf16.msra.mxu1 %v1965_v19 }
  0xa8   : > { %1970 = vmatprep.subr.bf16.mxu0 %v1969_v22  ;;  %2079 = vmatprep.subr.bf16.mxu1 %v1969_v22 }
  0xab   : > { %1972 = vmatpush3.bf16.msra.mxu0 %v1969_v22  ;;  %2087 = vmatpush3.bf16.msra.mxu1 %v1969_v22 }
  0xac   : > { %1974 = vmatprep.subr.bf16.mxu0 %v1973_v25  ;;  %2080 = vmatprep.subr.bf16.mxu1 %v1973_v25 }
  0xaf   : > { %1976 = vmatpush3.bf16.msra.mxu0 %v1973_v25  ;;  %2088 = vmatpush3.bf16.msra.mxu1 %v1973_v25 }
  0xb2   : > { %1754 = vmatmul.mubr.f32.vlgmr.msra.gmra.mrb[0].mxu0 %v356_v26  ;;  %1766 = vmatmul.mubr.f32.vlgmr.msra.gmra.mrb[0].mxu1 %v364_v27 }
  0xb3   : > { %1756 = vmatprep.mubr.f32.mxu0 %v357_v28  ;;  %1768 = vmatprep.mubr.f32.mxu1 %v365_v29 }
  0xb6   : > { %1757 = vmatmul.mubr.f32.gmra.mrb[2].mxu0 %v358_v30  ;;  %1769 = vmatmul.mubr.f32.gmra.mrb[2].mxu1 %v366_v31 }
  0xb7   : > { %1759 = vmatprep.mubr.f32.mxu0 %v359_v32  ;;  %1771 = vmatprep.mubr.f32.mxu1 %v367_v33 }
  0xba   : > { %1760 = vmatmul.mubr.f32.gmra.mrb[4].mxu0 %v360_v34  ;;  %1772 = vmatmul.mubr.f32.gmra.mrb[4].mxu1 %v368_v35 }
  0xbb   : > { %1762 = vmatprep.mubr.f32.mxu0 %v361_v36  ;;  %1774 = vmatprep.mubr.f32.mxu1 %v369_v37 }
  0xbe   : > { %1763 = vmatmul.mubr.f32.gmra.mrb[6].mxu0 %v362_v38  ;;  %1775 = vmatmul.mubr.f32.gmra.mrb[6].mxu1 %v370_v39 }
 0x185   : > { %v1755_v41 = vpop.f32.mrb[0].mxu0  ;;  %v1767_v42 = vpop.f32.mrb[0].mxu1 }
 0x186   : > { %v2802_v43 = vadd.f32 %v1755_v41, %v1577_v40  ;;  %v2804_v44 = vadd.f32 %v1767_v42, %v1577_v40  ;;  %v460_v45 = vpop.f32.mrb[1].mxu0  ;;  %v500_v46 = vpop.f32.mrb[1].mxu1 }
 0x187   : > { %v2806_v47 = vadd.f32 %v1577_v40, %v460_v45  ;;  %v2808_v48 = vadd.f32 %v1577_v40, %v500_v46 }
 0x189   : > { %v1758_v49 = vpop.f32.mrb[2].mxu0  ;;  %v1770_v50 = vpop.f32.mrb[2].mxu1 }
 0x18a   : > { %v2810_v51 = vadd.f32 %v1758_v49, %v1577_v40  ;;  %v2812_v52 = vadd.f32 %v1770_v50, %v1577_v40  ;;  %v470_v53 = vpop.f32.mrb[3].mxu0  ;;  %v510_v54 = vpop.f32.mrb[3].mxu1 }
 0x18b   : > { %v2814_v55 = vadd.f32 %v1577_v40, %v470_v53  ;;  %v2816_v56 = vadd.f32 %v1577_v40, %v510_v54 }
 0x18d   : > { %v1761_v57 = vpop.f32.mrb[4].mxu0  ;;  %v1773_v58 = vpop.f32.mrb[4].mxu1  ;;  %542 = sbr.rel (%p1578_p6) target bundleno = 458 (0x1ca), region = 68 }
 0x18e   : > { %v2818_v59 = vadd.f32 %v1761_v57, %v1577_v40  ;;  %v2820_v60 = vadd.f32 %v1773_v58, %v1577_v40  ;;  %v480_v61 = vpop.f32.mrb[5].mxu0  ;;  %v520_v62 = vpop.f32.mrb[5].mxu1 }
 0x18f   : > { %v2822_v63 = vadd.f32 %v1577_v40, %v480_v61  ;;  %v2824_v0 = vadd.f32 %v1577_v40, %v520_v62 }
 0x191   : > { %v1764_v1 = vpop.f32.mrb[6].mxu0  ;;  %v1776_v2 = vpop.f32.mrb[6].mxu1 }
 0x192   : > { %v2826_v3 = vadd.f32 %v1764_v1, %v1577_v40  ;;  %v2828_v4 = vadd.f32 %v1776_v2, %v1577_v40  ;;  %v490_v5 = vpop.f32.mrb[7].mxu0  ;;  %v530_v6 = vpop.f32.mrb[7].mxu1 }
 0x193   : > { %v2830_v7 = vadd.f32 %v1577_v40, %v490_v5  ;;  %v2832_v8 = vadd.f32 %v1577_v40, %v530_v6 }
 0x194   : > { %546 = sbr.rel (%p1579_p0) target bundleno = 411 (0x19b), region = 72  ;;  %v2486_v9 = vmov (!%p1579_p0), 0.0  }
 0x195   : > { %547 = vst [vmem:[#allocation2] sm:$0x1] (!%p1579_p0), %v2486_v9  ;;  %548 = vst [vmem:[#allocation3] sm:$0x1] (!%p1579_p0), %v2486_v9 }
 0x19b PF: > { %v550_v10 = vadd.f32 %v2802_v43, %v2806_v47  ;;  %v574_v11 = vmul.f32 %v2806_v47, %v2806_v47  ;;  %v575_v12 = vmul.f32 %v2802_v43, %v2802_v43  ;;  %v576_v14 = vmul.f32 %v2814_v55, %v2814_v55 }
 0x19c   : > { %v577_v16 = vmul.f32 %v2810_v51, %v2810_v51  ;;  %v578_v19 = vmul.f32 %v2822_v63, %v2822_v63  ;;  %v579_v22 = vmul.f32 %v2818_v59, %v2818_v59  ;;  %v580_v25 = vmul.f32 %v2830_v7, %v2830_v7 }
 0x19d   : > { %v551_v13 = vadd.f32 %v550_v10, %v2814_v55  ;;  %v590_v17 = vadd.f32 %v575_v12, %v574_v11  ;;  %v581_v28 = vmul.f32 %v2826_v3, %v2826_v3  ;;  %v582_v31 = vmul.f32 %v2808_v48, %v2808_v48 }
 0x19e   : > { %v583_v34 = vmul.f32 %v2804_v44, %v2804_v44  ;;  %v584_v37 = vmul.f32 %v2816_v56, %v2816_v56  ;;  %v585_v40 = vmul.f32 %v2812_v52, %v2812_v52  ;;  %v586_v45 = vmul.f32 %v2824_v0, %v2824_v0 }
 0x19f   : > { %v552_v15 = vadd.f32 %v551_v13, %v2810_v51  ;;  %v591_v20 = vadd.f32 %v590_v17, %v576_v14  ;;  %v587_v50 = vmul.f32 %v2820_v60, %v2820_v60  ;;  %v588_v57 = vmul.f32 %v2832_v8, %v2832_v8 }
 0x1a0   : > { %v589_v62 = vmul.f32 %v2828_v4, %v2828_v4 }
 0x1a1   : > { %v553_v18 = vadd.f32 %v552_v15, %v2822_v63  ;;  %v592_v23 = vadd.f32 %v591_v20, %v577_v16  ;;  %v549_v16 = vld [vmem:[#allocation2] sm:$0x1] }
 0x1a3   : > { %v554_v21 = vadd.f32 %v553_v18, %v2818_v59  ;;  %v593_v26 = vadd.f32 %v592_v23, %v578_v19 }
 0x1a5   : > { %v555_v24 = vadd.f32 %v554_v21, %v2830_v7  ;;  %v594_v29 = vadd.f32 %v593_v26, %v579_v22  ;;  %v573_v21 = vld [vmem:[#allocation3] sm:$0x1] }
 0x1a7   : > { %v556_v27 = vadd.f32 %v555_v24, %v2826_v3  ;;  %v595_v32 = vadd.f32 %v594_v29, %v580_v25 }
 0x1a9   : > { %v557_v30 = vadd.f32 %v556_v27, %v2808_v48  ;;  %v596_v35 = vadd.f32 %v595_v32, %v581_v28 }
 0x1ab   : > { %v558_v33 = vadd.f32 %v557_v30, %v2804_v44  ;;  %v597_v38 = vadd.f32 %v596_v35, %v582_v31 }
 0x1ad   : > { %v559_v36 = vadd.f32 %v558_v33, %v2816_v56  ;;  %v598_v41 = vadd.f32 %v597_v38, %v583_v34 }
 0x1af   : > { %v560_v39 = vadd.f32 %v559_v36, %v2812_v52  ;;  %v599_v46 = vadd.f32 %v598_v41, %v584_v37 }
 0x1b1   : > { %v561_v42 = vadd.f32 %v560_v39, %v2824_v0  ;;  %v600_v53 = vadd.f32 %v599_v46, %v585_v40 }
 0x1b3   : > { %v562_v49 = vadd.f32 %v561_v42, %v2820_v60  ;;  %v601_v58 = vadd.f32 %v600_v53, %v586_v45 }
 0x1b5   : > { %v563_v54 = vadd.f32 %v562_v49, %v2832_v8  ;;  %v602_v1 = vadd.f32 %v601_v58, %v587_v50 }
 0x1b7   : > { %v564_v61 = vadd.f32 %v563_v54, %v2828_v4  ;;  %v603_v5 = vadd.f32 %v602_v1, %v588_v57 }
 0x1b9   : > { %v565_v2 = vrot.slane %v564_v61, 4  ;;  %v604_v9 = vadd.f32 %v603_v5, %v589_v62 }
 0x1bb   : > { %v566_v6 = vadd.f32 %v565_v2, %v564_v61  ;;  %v605_v11 = vrot.slane %v604_v9, 4 }
 0x1bd   : > { %v567_v10 = vrot.slane %v566_v6, 2  ;;  %v606_v13 = vadd.f32 %v605_v11, %v604_v9 }
 0x1bf   : > { %v568_v12 = vadd.f32 %v567_v10, %v566_v6  ;;  %v607_v15 = vrot.slane %v606_v13, 2 }
 0x1c1   : > { %v569_v14 = vrot.slane %v568_v12, 1  ;;  %v608_v18 = vadd.f32 %v607_v15, %v606_v13 }
 0x1c3   : > { %v570_v17 = vadd.f32 %v569_v14, %v568_v12  ;;  %v609_v20 = vrot.slane %v608_v18, 1 }
 0x1c5   : > { %v571_v19 = vadd.f32 %v570_v17, %v549_v16  ;;  %v610_v22 = vadd.f32 %v609_v20, %v608_v18 }
 0x1c7   : > { %572 = vst [vmem:[#allocation2] sm:$0x1] %v571_v19  ;;  %v611_v23 = vadd.f32 %v610_v22, %v573_v21 }
 0x1c9   : > { %612 = vst [vmem:[#allocation3] sm:$0x1] %v611_v23 }
 0x1ca PF: > { %p1580_p3 = scmp.ne.s32.totalorder %s2466_s28, 1 }
 0x1cb   : > { %s3176_s9 = sld [smem:[#allocation20_spill]] (!%p1580_p3) }
 0x1cc   : > { %616 = sbr.rel (%p1580_p3) target bundleno = 773 (0x305), region = 76 }
 0x1d1   : > { %p1581_p5 = scmp.ne.s32.totalorder (!%p1580_p3), %s3176_s9, 0 }
 0x1d3   : > { %620 = sbr.rel (%p1581_p5) target bundleno = 474 (0x1da), region = 80  ;;  %v2487_v24 = vmov (!%p1581_p5), 0.0  }
 0x1d4   : > { %621 = vst [vmem:[#allocation4] sm:$0x1] (!%p1581_p5), %v2487_v24  ;;  %622 = vst [vmem:[#allocation5] sm:$0x1] (!%p1581_p5), %v2487_v24 }
 0x1da PF: > { %v692_v25 = vld [vmem:[#allocation11] sm:$0xff]  ;;  %v693_v26 = vld [vmem:[#allocation11 + $0x8] sm:$0xff]  ;;  %v694_v27 = vld [vmem:[#allocation11 + $0x10] sm:$0xff]  ;;  %v631_v42 = vlaneseq  ;;  %s3177_s6 = sld [smem:[#allocation22_spill]] }
 0x1db   : > { %v1977_v28 = vpack.c.bf16 %v693_v26, %v692_v25  ;;  %v695_v29 = vld [vmem:[#allocation11 + $0x18] sm:$0xff]  ;;  %v696_v31 = vld [vmem:[#allocation11 + $0x20] sm:$0xff]  ;;  %v697_v32 = vld [vmem:[#allocation11 + $0x28] sm:$0xff] }
 0x1dc   : > { %v1981_v30 = vpack.c.bf16 %v695_v29, %v694_v27  ;;  %v1985_v33 = vpack.c.bf16 %v697_v32, %v696_v31  ;;  %v623_v34 = vld [vmem:[#allocation2] sm:$0x1]  ;;  %v625_v35 = vld [vmem:[#allocation3] sm:$0x1]  ;;  %v698_v36 = vld [vmem:[#allocation11 + $0x30] sm:$0xff]  ;;  %v632_v54 = vshrl.u32 %v631_v42, 7 }
 0x1dd   : > { %1978 = vmatprep.subr.bf16.mxu0 %v1977_v28  ;;  %2089 = vmatprep.subr.bf16.mxu1 %v1977_v28  ;;  %v699_v37 = vld [vmem:[#allocation11 + $0x38] sm:$0xff]  ;;  %v624_v38 = vmul.f32 0.001953125, %v623_v34  ;;  %v626_v39 = vmul.f32 0.001953125, %v625_v35  ;;  %v700_v45 = vld [vmem:[#allocation11 + $0x40] sm:$0xff]  ;;  %v701_v46 = vld [vmem:[#allocation11 + $0x48] sm:$0xff] }
 0x1de   : > { %1980 = vmatpush3.bf16.msra.mxu0 %v1977_v28  ;;  %2097 = vmatpush3.bf16.msra.mxu1 %v1977_v28  ;;  %v1989_v41 = vpack.c.bf16 %v699_v37, %v698_v36  ;;  %v1993_v53 = vpack.c.bf16 %v701_v46, %v700_v45  ;;  %v702_v57 = vld [vmem:[#allocation11 + $0x50] sm:$0xff]  ;;  %v703_v58 = vld [vmem:[#allocation11 + $0x58] sm:$0xff]  ;;  %v633_v1 = vsub.s32 0, %v632_v54  ;;  %v704_v2 = vld [vmem:[#allocation11 + $0x60] sm:$0xff] }
 0x1df   : > { %1982 = vmatprep.subr.bf16.mxu0 %v1981_v30  ;;  %2090 = vmatprep.subr.bf16.mxu1 %v1981_v30  ;;  %v627_v40 = vmul.f32 %v624_v38, %v624_v38  ;;  %v1997_v62 = vpack.c.bf16 %v703_v58, %v702_v57  ;;  %v705_v5 = vld [vmem:[#allocation11 + $0x68] sm:$0xff]  ;;  %v706_v9 = vld [vmem:[#allocation11 + $0x70] sm:$0xff]  ;;  %v707_v10 = vld [vmem:[#allocation11 + $0x78] sm:$0xff] }
 0x1e0   : > { %v2001_v6 = vpack.c.bf16 %v705_v5, %v704_v2  ;;  %v2890_v11 = vrot.slane %v624_v38, %v633_v1  ;;  %v2005_v12 = vpack.c.bf16 %v707_v10, %v706_v9 }
 0x1e1   : > { %v628_v49 = vsub.f32 %v626_v39, %v627_v40 }
 0x1e2   : > { %1984 = vmatpush3.bf16.msra.mxu0 %v1981_v30  ;;  %2098 = vmatpush3.bf16.msra.mxu1 %v1981_v30  ;;  %v636_v13 = vsub.f32 %v2806_v47, %v2890_v11  ;;  %v637_v14 = vsub.f32 %v2802_v43, %v2890_v11  ;;  %v638_v15 = vsub.f32 %v2814_v55, %v2890_v11 }
 0x1e3   : > { %1986 = vmatprep.subr.bf16.mxu0 %v1985_v33  ;;  %2091 = vmatprep.subr.bf16.mxu1 %v1985_v33  ;;  %v629_v50 = vmax.f32 %v628_v49, 0.0  ;;  %v639_v17 = vsub.f32 %v2810_v51, %v2890_v11  ;;  %v640_v19 = vsub.f32 %v2822_v63, %v2890_v11  ;;  %v644_v20 = vsub.f32 %v2808_v48, %v2890_v11 }
 0x1e4   : > { %v645_v21 = vsub.f32 %v2804_v44, %v2890_v11  ;;  %v646_v25 = vsub.f32 %v2816_v56, %v2890_v11  ;;  %v641_v27 = vsub.f32 %v2818_v59, %v2890_v11  ;;  %v647_v28 = vsub.f32 %v2812_v52, %v2890_v11 }
 0x1e5   : > { %v652_v61 = vadd.f32 1e-05, %v629_v50  ;;  %v648_v31 = vsub.f32 %v2824_v0, %v2890_v11  ;;  %v642_v34 = vsub.f32 %v2830_v7, %v2890_v11  ;;  %v643_v35 = vsub.f32 %v2826_v3, %v2890_v11 }
 0x1e6   : > { %1988 = vmatpush3.bf16.msra.mxu0 %v1985_v33  ;;  %2099 = vmatpush3.bf16.msra.mxu1 %v1985_v33  ;;  %v649_v39 = vsub.f32 %v2820_v60, %v2890_v11  ;;  %v650_v45 = vsub.f32 %v2832_v8, %v2890_v11 }
 0x1e7   : > { %1990 = vmatprep.subr.bf16.mxu0 %v1989_v41  ;;  %2092 = vmatprep.subr.bf16.mxu1 %v1989_v41  ;;  %2220 = vrsqrt.f32 %v652_v61 }
 0x1ea   : > { %1992 = vmatpush3.bf16.msra.mxu0 %v1989_v41  ;;  %2100 = vmatpush3.bf16.msra.mxu1 %v1989_v41 }
 0x1eb   : > { %1994 = vmatprep.subr.bf16.mxu0 %v1993_v53  ;;  %2093 = vmatprep.subr.bf16.mxu1 %v1993_v53 }
 0x1ee   : > { %1996 = vmatpush3.bf16.msra.mxu0 %v1993_v53  ;;  %2101 = vmatpush3.bf16.msra.mxu1 %v1993_v53 }
 0x1ef   : > { %1998 = vmatprep.subr.bf16.mxu0 %v1997_v62  ;;  %2094 = vmatprep.subr.bf16.mxu1 %v1997_v62 }
 0x1f1   : > { %v2221_v16 = vpop.eup %2220 }
 0x1f2   : > { %2000 = vmatpush3.bf16.msra.mxu0 %v1997_v62  ;;  %2102 = vmatpush3.bf16.msra.mxu1 %v1997_v62  ;;  %v658_v18 = vrot.slane %v2221_v16, %v633_v1  ;;  %v651_v62 = vsub.f32 %v2828_v4, %v2890_v11  ;;  %v2927_v11 = vld [vmem:[%s3177_s6] ss:$0 sm:$0xff] }
 0x1f3   : > { %2002 = vmatprep.subr.bf16.mxu0 %v2001_v6  ;;  %2095 = vmatprep.subr.bf16.mxu1 %v2001_v6 }
 0x1f4   : > { %v660_v22 = vmul.f32 %v658_v18, %v636_v13  ;;  %v661_v23 = vmul.f32 %v658_v18, %v637_v14  ;;  %v662_v24 = vmul.f32 %v658_v18, %v638_v15  ;;  %v663_v26 = vmul.f32 %v658_v18, %v639_v17 }
 0x1f5   : > { %v664_v33 = vmul.f32 %v658_v18, %v640_v19  ;;  %v668_v36 = vmul.f32 %v658_v18, %v644_v20  ;;  %v669_v37 = vmul.f32 %v658_v18, %v645_v21  ;;  %v670_v38 = vmul.f32 %v658_v18, %v646_v25 }
 0x1f6   : > { %2004 = vmatpush3.bf16.msra.mxu0 %v2001_v6  ;;  %2103 = vmatpush3.bf16.msra.mxu1 %v2001_v6  ;;  %v676_v29 = vmax.f32 %v660_v22, 0.0  ;;  %v677_v30 = vmax.f32 %v661_v23, 0.0  ;;  %v678_v32 = vmax.f32 %v662_v24, 0.0  ;;  %v679_v40 = vmax.f32 %v663_v26, 0.0 }
 0x1f7   : > { %2006 = vmatprep.subr.bf16.mxu0 %v2005_v12  ;;  %2096 = vmatprep.subr.bf16.mxu1 %v2005_v12  ;;  %v665_v41 = vmul.f32 %v658_v18, %v641_v27  ;;  %v671_v42 = vmul.f32 %v658_v18, %v647_v28  ;;  %v684_v46 = vmax.f32 %v668_v36, 0.0  ;;  %v685_v49 = vmax.f32 %v669_v37, 0.0 }
 0x1f8   : > { %1809 = vmatprep.mubr.f32.mxu0 %v676_v29  ;;  %v686_v50 = vmax.f32 %v670_v38, 0.0  ;;  %v672_v53 = vmul.f32 %v658_v18, %v648_v31  ;;  %v680_v54 = vmax.f32 %v664_v33, 0.0  ;;  %v666_v57 = vmul.f32 %v658_v18, %v642_v34 }
 0x1f9   : > { %1821 = vmatprep.mubr.f32.mxu1 %v684_v46  ;;  %v687_v58 = vmax.f32 %v671_v42, 0.0  ;;  %v673_v61 = vmul.f32 %v658_v18, %v649_v39  ;;  %v681_v1 = vmax.f32 %v665_v41, 0.0  ;;  %v667_v2 = vmul.f32 %v658_v18, %v643_v35 }
 0x1fa   : > { %2008 = vmatpush3.bf16.msra.mxu0 %v2005_v12  ;;  %2104 = vmatpush3.bf16.msra.mxu1 %v2005_v12  ;;  %v688_v5 = vmax.f32 %v672_v53, 0.0  ;;  %v674_v6 = vmul.f32 %v658_v18, %v650_v45  ;;  %v682_v9 = vmax.f32 %v666_v57, 0.0  ;;  %v675_v12 = vmul.f32 %v658_v18, %v651_v62 }
 0x1fb   : > { %v689_v10 = vmax.f32 %v673_v61, 0.0  ;;  %v683_v13 = vmax.f32 %v667_v2, 0.0 }
 0x1fc   : > { %v690_v14 = vmax.f32 %v674_v6, 0.0  ;;  %v691_v15 = vmax.f32 %v675_v12, 0.0 }
 0x1fd   : > { %1810 = vmatmul.mubr.f32.vlgmr.msra.gmra.mrb[0].mxu0 %v677_v30  ;;  %1822 = vmatmul.mubr.f32.vlgmr.msra.gmra.mrb[0].mxu1 %v685_v49 }
 0x1fe   : > { %1812 = vmatprep.mubr.f32.mxu0 %v678_v32  ;;  %1824 = vmatprep.mubr.f32.mxu1 %v686_v50 }
 0x201   : > { %1813 = vmatmul.mubr.f32.gmra.mrb[2].mxu0 %v679_v40  ;;  %1825 = vmatmul.mubr.f32.gmra.mrb[2].mxu1 %v687_v58 }
 0x202   : > { %1815 = vmatprep.mubr.f32.mxu0 %v680_v54  ;;  %1827 = vmatprep.mubr.f32.mxu1 %v688_v5 }
 0x205   : > { %1816 = vmatmul.mubr.f32.gmra.mrb[4].mxu0 %v681_v1  ;;  %1828 = vmatmul.mubr.f32.gmra.mrb[4].mxu1 %v689_v10 }
 0x206   : > { %1818 = vmatprep.mubr.f32.mxu0 %v682_v9  ;;  %1830 = vmatprep.mubr.f32.mxu1 %v690_v14 }
 0x209   : > { %1819 = vmatmul.mubr.f32.gmra.mrb[6].mxu0 %v683_v13  ;;  %1831 = vmatmul.mubr.f32.gmra.mrb[6].mxu1 %v691_v15 }
 0x2d0   : > { %v1811_v16 = vpop.f32.mrb[0].mxu0  ;;  %v1823_v21 = vpop.f32.mrb[0].mxu1 }
 0x2d1   : > { %v787_v17 = vadd.f32 %v1811_v16, %v2927_v11  ;;  %v781_v19 = vpop.f32.mrb[1].mxu0  ;;  %v821_v25 = vpop.f32.mrb[1].mxu1  ;;  %v827_v12 = vadd.f32 %v1823_v21, %v2927_v11 }
 0x2d2   : > { %v782_v18 = vadd.f32 %v2927_v11, %v781_v19  ;;  %v822_v57 = vadd.f32 %v2927_v11, %v821_v25 }
 0x2d3   : > { %v886_v20 = vmul.f32 %v787_v17, %v787_v17 }
 0x2d4   : > { %v861_v22 = vadd.f32 %v787_v17, %v782_v18  ;;  %v885_v23 = vmul.f32 %v782_v18, %v782_v18  ;;  %v1814_v24 = vpop.f32.mrb[2].mxu0  ;;  %v1826_v30 = vpop.f32.mrb[2].mxu1  ;;  %v893_v13 = vmul.f32 %v822_v57, %v822_v57 }
 0x2d5   : > { %v791_v26 = vpop.f32.mrb[3].mxu0  ;;  %v797_v28 = vadd.f32 %v1814_v24, %v2927_v11  ;;  %v831_v34 = vpop.f32.mrb[3].mxu1 }
 0x2d6   : > { %v901_v27 = vadd.f32 %v886_v20, %v885_v23  ;;  %v792_v29 = vadd.f32 %v2927_v11, %v791_v26  ;;  %v832_v17 = vadd.f32 %v2927_v11, %v831_v34  ;;  %v894_v20 = vmul.f32 %v827_v12, %v827_v12 }
 0x2d7   : > { %v888_v37 = vmul.f32 %v797_v28, %v797_v28 }
 0x2d8   : > { %v862_v31 = vadd.f32 %v861_v22, %v792_v29  ;;  %v887_v32 = vmul.f32 %v792_v29, %v792_v29  ;;  %v1817_v33 = vpop.f32.mrb[4].mxu0  ;;  %v1829_v41 = vpop.f32.mrb[4].mxu1  ;;  %v837_v22 = vadd.f32 %v1826_v30, %v2927_v11  ;;  %v895_v25 = vmul.f32 %v832_v17, %v832_v17 }
 0x2d9   : > { %v807_v35 = vadd.f32 %v1817_v33, %v2927_v11  ;;  %v801_v36 = vpop.f32.mrb[5].mxu0  ;;  %v841_v50 = vpop.f32.mrb[5].mxu1  ;;  %v847_v21 = vadd.f32 %v1829_v41, %v2927_v11 }
 0x2da   : > { %v902_v38 = vadd.f32 %v901_v27, %v887_v32  ;;  %v802_v39 = vadd.f32 %v2927_v11, %v801_v36  ;;  %v863_v40 = vadd.f32 %v862_v31, %v797_v28  ;;  %v842_v26 = vadd.f32 %v2927_v11, %v841_v50 }
 0x2db   : > { %v890_v53 = vmul.f32 %v807_v35, %v807_v35  ;;  %v896_v29 = vmul.f32 %v837_v22, %v837_v22 }
 0x2dc   : > { %v864_v42 = vadd.f32 %v863_v40, %v802_v39  ;;  %v889_v45 = vmul.f32 %v802_v39, %v802_v39  ;;  %v903_v46 = vadd.f32 %v902_v38, %v888_v37  ;;  %v1820_v49 = vpop.f32.mrb[6].mxu0  ;;  %v1832_v2 = vpop.f32.mrb[6].mxu1  ;;  %v897_v33 = vmul.f32 %v842_v26, %v842_v26 }
 0x2dd   : > { %v811_v54 = vpop.f32.mrb[7].mxu0  ;;  %v817_v61 = vadd.f32 %v1820_v49, %v2927_v11  ;;  %v851_v10 = vpop.f32.mrb[7].mxu1  ;;  %v898_v37 = vmul.f32 %v847_v21, %v847_v21  ;;  %v857_v30 = vadd.f32 %v1832_v2, %v2927_v11  ;;  %v884_v2 = vld [vmem:[#allocation5] sm:$0x1] }
 0x2de   : > { %v904_v58 = vadd.f32 %v903_v46, %v889_v45  ;;  %v812_v62 = vadd.f32 %v2927_v11, %v811_v54  ;;  %v865_v1 = vadd.f32 %v864_v42, %v807_v35  ;;  %v852_v34 = vadd.f32 %v2927_v11, %v851_v10 }
 0x2df   : > { %v892_v14 = vmul.f32 %v817_v61, %v817_v61  ;;  %v900_v46 = vmul.f32 %v857_v30, %v857_v30 }
 0x2e0   : > { %v866_v5 = vadd.f32 %v865_v1, %v812_v62  ;;  %v891_v6 = vmul.f32 %v812_v62, %v812_v62  ;;  %v905_v9 = vadd.f32 %v904_v58, %v890_v53  ;;  %v899_v40 = vmul.f32 %v852_v34, %v852_v34 }
 0x2e2   : > { %v906_v15 = vadd.f32 %v905_v9, %v891_v6  ;;  %v867_v16 = vadd.f32 %v866_v5, %v817_v61  ;;  %v860_v9 = vld [vmem:[#allocation4] sm:$0x1] }
 0x2e4   : > { %v868_v19 = vadd.f32 %v867_v16, %v822_v57  ;;  %v907_v18 = vadd.f32 %v906_v15, %v892_v14 }
 0x2e6   : > { %v908_v23 = vadd.f32 %v907_v18, %v893_v13  ;;  %v869_v24 = vadd.f32 %v868_v19, %v827_v12 }
 0x2e8   : > { %v870_v27 = vadd.f32 %v869_v24, %v832_v17  ;;  %v909_v28 = vadd.f32 %v908_v23, %v894_v20 }
 0x2ea   : > { %v910_v31 = vadd.f32 %v909_v28, %v895_v25  ;;  %v871_v32 = vadd.f32 %v870_v27, %v837_v22 }
 0x2ec   : > { %v872_v35 = vadd.f32 %v871_v32, %v842_v26  ;;  %v911_v36 = vadd.f32 %v910_v31, %v896_v29 }
 0x2ee   : > { %v912_v38 = vadd.f32 %v911_v36, %v897_v33  ;;  %v873_v39 = vadd.f32 %v872_v35, %v847_v21 }
 0x2f0   : > { %v874_v42 = vadd.f32 %v873_v39, %v852_v34  ;;  %v913_v45 = vadd.f32 %v912_v38, %v898_v37 }
 0x2f2   : > { %v875_v49 = vadd.f32 %v874_v42, %v857_v30  ;;  %v914_v50 = vadd.f32 %v913_v45, %v899_v40 }
 0x2f4   : > { %v876_v53 = vrot.slane %v875_v49, 4  ;;  %v915_v41 = vadd.f32 %v914_v50, %v900_v46 }
 0x2f6   : > { %v877_v54 = vadd.f32 %v876_v53, %v875_v49  ;;  %v916_v57 = vrot.slane %v915_v41, 4 }
 0x2f8   : > { %v878_v58 = vrot.slane %v877_v54, 2  ;;  %v917_v61 = vadd.f32 %v916_v57, %v915_v41 }
 0x2fa   : > { %v879_v62 = vadd.f32 %v878_v58, %v877_v54  ;;  %v918_v1 = vrot.slane %v917_v61, 2 }
 0x2fc   : > { %v880_v5 = vrot.slane %v879_v62, 1  ;;  %v919_v6 = vadd.f32 %v918_v1, %v917_v61 }
 0x2fe   : > { %v881_v10 = vadd.f32 %v880_v5, %v879_v62  ;;  %v920_v11 = vrot.slane %v919_v6, 1 }
 0x300   : > { %v882_v12 = vadd.f32 %v881_v10, %v860_v9  ;;  %v921_v13 = vadd.f32 %v920_v11, %v919_v6 }
 0x302   : > { %883 = vst [vmem:[#allocation4] sm:$0x1] %v882_v12  ;;  %v922_v14 = vadd.f32 %v921_v13, %v884_v2 }
 0x304   : > { %923 = vst [vmem:[#allocation5] sm:$0x1] %v922_v14 }
 0x305 PF: > { %p1583_p10 = scmp.ne.s32.totalorder %s2466_s28, 2 }
 0x306   : > { %v997_v15 = vld [vmem:[#allocation11] sm:$0xff] (!%p1583_p10)  ;;  %v998_v16 = vld [vmem:[#allocation11 + $0x8] sm:$0xff] (!%p1583_p10)  ;;  %v999_v17 = vld [vmem:[#allocation11 + $0x10] sm:$0xff] (!%p1583_p10)  ;;  %v936_v40 = vlaneseq (!%p1583_p10)  ;;  %s3178_s16 = sld [smem:[#allocation22_spill]] (!%p1583_p10)  ;;  %s3179_s21 = sld [smem:[#allocation23_spill]] (!%p1583_p10) }
 0x307   : > { %927 = sbr.rel (%p1583_p10) target bundleno = 1286 (0x506), region = 84  ;;  %v2009_v19 = vpack.c.bf16 (!%p1583_p10), %v998_v16, %v997_v15  ;;  %v1000_v18 = vld [vmem:[#allocation11 + $0x18] sm:$0xff] (!%p1583_p10)  ;;  %v1001_v22 = vld [vmem:[#allocation11 + $0x20] sm:$0xff] (!%p1583_p10)  ;;  %v1002_v23 = vld [vmem:[#allocation11 + $0x28] sm:$0xff] (!%p1583_p10) }
 0x308   : > { %v2013_v20 = vpack.c.bf16 (!%p1583_p10), %v1000_v18, %v999_v17  ;;  %v1003_v24 = vld [vmem:[#allocation11 + $0x30] sm:$0xff] (!%p1583_p10)  ;;  %v2017_v25 = vpack.c.bf16 (!%p1583_p10), %v1002_v23, %v1001_v22  ;;  %v1004_v26 = vld [vmem:[#allocation11 + $0x38] sm:$0xff] (!%p1583_p10)  ;;  %v1234_v31 = vld [vmem:[#allocation12] sm:$0xff] (!%p1583_p10)  ;;  %v937_v57 = vshrl.u32 (!%p1583_p10), %v936_v40, 7 }
 0x309   : > { %2010 = vmatprep.subr.bf16.mxu0 (!%p1583_p10), %v2009_v19  ;;  %v928_v27 = vld [vmem:[#allocation2] sm:$0x1] (!%p1583_p10)  ;;  %v930_v28 = vld [vmem:[#allocation3] sm:$0x1] (!%p1583_p10)  ;;  %v1235_v32 = vld [vmem:[#allocation12 + $0x8] sm:$0xff] (!%p1583_p10)  ;;  %v2021_v39 = vpack.c.bf16 (!%p1583_p10), %v1004_v26, %v1003_v24 }
 0x30a   : > { %2012 = vmatpush3.bf16.msra.mxu0 (!%p1583_p10), %v2009_v19  ;;  %v929_v29 = vmul.f32 (!%p1583_p10), 0.001953125, %v928_v27  ;;  %v931_v21 = vmul.f32 (!%p1583_p10), 0.001953125, %v930_v28  ;;  %v1236_v33 = vld [vmem:[#allocation12 + $0x10] sm:$0xff] (!%p1583_p10)  ;;  %v2041_v34 = vpack.c.bf16 (!%p1583_p10), %v1235_v32, %v1234_v31  ;;  %v1237_v35 = vld [vmem:[#allocation12 + $0x18] sm:$0xff] (!%p1583_p10)  ;;  %v1238_v38 = vld [vmem:[#allocation12 + $0x20] sm:$0xff] (!%p1583_p10)  ;;  %v2946_v10 = vsub.s32 (!%p1583_p10), 0, %v937_v57 }
 0x30b   : > { %2014 = vmatprep.subr.bf16.mxu0 (!%p1583_p10), %v2013_v20  ;;  %v2045_v37 = vpack.c.bf16 (!%p1583_p10), %v1237_v35, %v1236_v33  ;;  %v1239_v30 = vld [vmem:[#allocation12 + $0x28] sm:$0xff] (!%p1583_p10)  ;;  %v1005_v42 = vld [vmem:[#allocation11 + $0x40] sm:$0xff] (!%p1583_p10)  ;;  %v1240_v53 = vld [vmem:[#allocation12 + $0x30] sm:$0xff] (!%p1583_p10) }
 0x30c   : > { %v932_v36 = vmul.f32 (!%p1583_p10), %v929_v29, %v929_v29  ;;  %2042 = vmatprep.subr.bf16.mxu1 (!%p1583_p10), %v2041_v34  ;;  %v1006_v45 = vld [vmem:[#allocation11 + $0x48] sm:$0xff] (!%p1583_p10)  ;;  %v2049_v49 = vpack.c.bf16 (!%p1583_p10), %v1239_v30, %v1238_v38  ;;  %v1241_v41 = vld [vmem:[#allocation12 + $0x38] sm:$0xff] (!%p1583_p10)  ;;  %v1007_v58 = vld [vmem:[#allocation11 + $0x50] sm:$0xff] (!%p1583_p10)  ;;  %v2949_v16 = vrot.slane (!%p1583_p10), %v929_v29, %v2946_v10 }
 0x30d   : > { %2044 = vmatpush3.bf16.msra.mxu1 (!%p1583_p10), %v2041_v34  ;;  %v2025_v54 = vpack.c.bf16 (!%p1583_p10), %v1006_v45, %v1005_v42  ;;  %v1008_v61 = vld [vmem:[#allocation11 + $0x58] sm:$0xff] (!%p1583_p10)  ;;  %v2053_v1 = vpack.c.bf16 (!%p1583_p10), %v1241_v41, %v1240_v53  ;;  %v1242_v5 = vld [vmem:[#allocation12 + $0x40] sm:$0xff] (!%p1583_p10)  ;;  %v1243_v6 = vld [vmem:[#allocation12 + $0x48] sm:$0xff] (!%p1583_p10) }
 0x30e   : > { %2016 = vmatpush3.bf16.msra.mxu0 %v2013_v20  ;;  %v933_v46 = vsub.f32 %v931_v21, %v932_v36  ;;  %2046 = vmatprep.subr.bf16.mxu1 %v2045_v37  ;;  %v2029_v9 = vpack.c.bf16 %v1008_v61, %v1007_v58  ;;  %v1009_v11 = vld [vmem:[#allocation11 + $0x60] sm:$0xff]  ;;  %v1010_v2 = vld [vmem:[#allocation11 + $0x68] sm:$0xff]  ;;  %v2057_v12 = vpack.c.bf16 %v1243_v6, %v1242_v5  ;;  %v1244_v13 = vld [vmem:[#allocation12 + $0x50] sm:$0xff] }
 0x30f   : > { %2018 = vmatprep.subr.bf16.mxu0 %v2017_v25  ;;  %v1245_v14 = vld [vmem:[#allocation12 + $0x58] sm:$0xff]  ;;  %v2033_v15 = vpack.c.bf16 %v1010_v2, %v1009_v11  ;;  %v1011_v17 = vld [vmem:[#allocation11 + $0x70] sm:$0xff]  ;;  %v941_v22 = vsub.f32 %v2806_v47, %v2949_v16  ;;  %v942_v23 = vsub.f32 %v2802_v43, %v2949_v16  ;;  %v943_v24 = vsub.f32 %v2814_v55, %v2949_v16  ;;  %v1246_v11 = vld [vmem:[#allocation12 + $0x60] sm:$0xff] }
 0x310   : > { %v934_v50 = vmax.f32 %v933_v46, 0.0  ;;  %v1012_v19 = vld [vmem:[#allocation11 + $0x78] sm:$0xff]  ;;  %v2061_v18 = vpack.c.bf16 %v1245_v14, %v1244_v13  ;;  %v944_v27 = vsub.f32 %v2810_v51, %v2949_v16  ;;  %v945_v28 = vsub.f32 %v2822_v63, %v2949_v16 }
 0x311   : > { %2048 = vmatpush3.bf16.msra.mxu1 %v2045_v37  ;;  %v2037_v20 = vpack.c.bf16 %v1012_v19, %v1011_v17  ;;  %v946_v32 = vsub.f32 %v2818_v59, %v2949_v16  ;;  %v947_v51 = vsub.f32 %v2830_v7, %v2949_v16  ;;  %v948_v36 = vsub.f32 %v2826_v3, %v2949_v16  ;;  %v1249_v13 = vld [vmem:[#allocation12 + $0x78] sm:$0xff] }
 0x312   : > { %2020 = vmatpush3.bf16.msra.mxu0 %v2017_v25  ;;  %v957_v62 = vadd.f32 1e-05, %v934_v50  ;;  %2050 = vmatprep.subr.bf16.mxu1 %v2049_v49  ;;  %v949_v30 = vsub.f32 %v2808_v48, %v2949_v16  ;;  %v950_v40 = vsub.f32 %v2804_v44, %v2949_v16  ;;  %v951_v45 = vsub.f32 %v2816_v56, %v2949_v16  ;;  %v1165_v14 = vld [vmem:[#allocation4] sm:$0x1] }
 0x313   : > { %2022 = vmatprep.subr.bf16.mxu0 %v2021_v39  ;;  %v953_v53 = vsub.f32 %v2824_v0, %v2949_v16  ;;  %v955_v58 = vsub.f32 %v2832_v8, %v2949_v16  ;;  %v1247_v8 = vld [vmem:[#allocation12 + $0x68] sm:$0xff] }
 0x314   : > { %2222 = vrsqrt.f32 %v957_v62  ;;  %v956_v62 = vsub.f32 %v2828_v4, %v2949_v16  ;;  %v2065_v2 = vpack.c.bf16 %v1247_v8, %v1246_v11 }
 0x315   : > { %2052 = vmatpush3.bf16.msra.mxu1 %v2049_v49  ;;  %v952_v49 = vsub.f32 %v2812_v52, %v2949_v16 }
 0x316   : > { %2024 = vmatpush3.bf16.msra.mxu0 %v2021_v39  ;;  %2054 = vmatprep.subr.bf16.mxu1 %v2053_v1 }
 0x317   : > { %2026 = vmatprep.subr.bf16.mxu0 %v2025_v54 }
 0x319   : > { %2056 = vmatpush3.bf16.msra.mxu1 %v2053_v1 }
 0x31a   : > { %2028 = vmatpush3.bf16.msra.mxu0 %v2025_v54  ;;  %2058 = vmatprep.subr.bf16.mxu1 %v2057_v12  ;;  %v954_v54 = vsub.f32 %v2820_v60, %v2949_v16  ;;  %v1167_v16 = vld [vmem:[#allocation5] sm:$0x1] }
 0x31b   : > { %2030 = vmatprep.subr.bf16.mxu0 %v2029_v9  ;;  %v1168_v17 = vmul.f32 0.001953125, %v1167_v16 }
 0x31d   : > { %2060 = vmatpush3.bf16.msra.mxu1 %v2057_v12  ;;  %v1248_v12 = vld [vmem:[#allocation12 + $0x70] sm:$0xff] }
 0x31e   : > { %2032 = vmatpush3.bf16.msra.mxu0 %v2029_v9  ;;  %v2223_v25 = vpop.eup %2222  ;;  %2062 = vmatprep.subr.bf16.mxu1 %v2061_v18  ;;  %v2069_v4 = vpack.c.bf16 %v1249_v13, %v1248_v12 }
 0x31f   : > { %2034 = vmatprep.subr.bf16.mxu0 %v2033_v15  ;;  %v963_v26 = vrot.slane %v2223_v25, %v2946_v10 }
 0x321   : > { %v965_v47 = vmul.f32 %v963_v26, %v941_v22  ;;  %v966_v29 = vmul.f32 %v963_v26, %v942_v23  ;;  %v967_v21 = vmul.f32 %v963_v26, %v943_v24  ;;  %2064 = vmatpush3.bf16.msra.mxu1 %v2061_v18  ;;  %v968_v55 = vmul.f32 %v963_v26, %v944_v27  ;;  %v2987_v24 = vld [vmem:[%s3178_s16] ss:$0 sm:$0xff] }
 0x322   : > { %2036 = vmatpush3.bf16.msra.mxu0 %v2033_v15  ;;  %v969_v34 = vmul.f32 %v963_v26, %v945_v28  ;;  %v970_v35 = vmul.f32 %v963_v26, %v946_v32  ;;  %v971_v38 = vmul.f32 %v963_v26, %v947_v51  ;;  %v972_v39 = vmul.f32 %v963_v26, %v948_v36 }
 0x323   : > { %2038 = vmatprep.subr.bf16.mxu0 %v2037_v20  ;;  %v981_v43 = vmax.f32 %v965_v47, 0.0  ;;  %v982_v31 = vmax.f32 %v966_v29, 0.0  ;;  %v983_v33 = vmax.f32 %v967_v21, 0.0  ;;  %v984_v63 = vmax.f32 %v968_v55, 0.0  ;;  %2066 = vmatprep.subr.bf16.mxu1 %v2065_v2 }
 0x324   : > { %v985_v37 = vmax.f32 %v969_v34, 0.0  ;;  %v986_v59 = vmax.f32 %v970_v35, 0.0  ;;  %v987_v7 = vmax.f32 %v971_v38, 0.0  ;;  %v973_v42 = vmul.f32 %v963_v26, %v949_v30 }
 0x325   : > { %1865 = vmatprep.mubr.f32.mxu0 %v981_v43  ;;  %v988_v3 = vmax.f32 %v972_v39, 0.0  ;;  %v974_v46 = vmul.f32 %v963_v26, %v950_v40  ;;  %v975_v50 = vmul.f32 %v963_v26, %v951_v45  ;;  %v976_v41 = vmul.f32 %v963_v26, %v952_v49  ;;  %2068 = vmatpush3.bf16.msra.mxu1 %v2065_v2 }
 0x326   : > { %2040 = vmatpush3.bf16.msra.mxu0 %v2037_v20  ;;  %v989_v48 = vmax.f32 %v973_v42, 0.0  ;;  %v977_v57 = vmul.f32 %v963_v26, %v953_v53  ;;  %v978_v61 = vmul.f32 %v963_v26, %v954_v54  ;;  %v979_v1 = vmul.f32 %v963_v26, %v955_v58  ;;  %2070 = vmatprep.subr.bf16.mxu1 %v2069_v4 }
 0x327   : > { %v990_v44 = vmax.f32 %v974_v46, 0.0  ;;  %v991_v56 = vmax.f32 %v975_v50, 0.0  ;;  %v992_v52 = vmax.f32 %v976_v41, 0.0  ;;  %v980_v6 = vmul.f32 %v963_v26, %v956_v62 }
 0x328   : > { %v993_v0 = vmax.f32 %v977_v57, 0.0  ;;  %v994_v5 = vmax.f32 %v978_v61, 0.0  ;;  %v995_v60 = vmax.f32 %v979_v1, 0.0  ;;  %v1166_v15 = vmul.f32 0.001953125, %v1165_v14 }
 0x329   : > { %1866 = vmatmul.mubr.f32.vlgmr.msra.gmra.mrb[0].mxu0 %v982_v31  ;;  %v996_v9 = vmax.f32 %v980_v6, 0.0  ;;  %2072 = vmatpush3.bf16.msra.mxu1 %v2069_v4 }
 0x32a   : > { %1868 = vmatprep.mubr.f32.mxu0 %v983_v33  ;;  %v1169_v19 = vmul.f32 %v1166_v15, %v1166_v15  ;;  %v2990_v25 = vrot.slane %v1166_v15, %v2946_v10 }
 0x32c   : > { %v1170_v18 = vsub.f32 %v1168_v17, %v1169_v19 }
 0x32d   : > { %1869 = vmatmul.mubr.f32.gmra.mrb[2].mxu0 %v984_v63 }
 0x32e   : > { %1871 = vmatprep.mubr.f32.mxu0 %v985_v37  ;;  %v1171_v20 = vmax.f32 %v1170_v18, 0.0 }
 0x330   : > { %v1194_v22 = vadd.f32 1e-05, %v1171_v20 }
 0x331   : > { %1872 = vmatmul.mubr.f32.gmra.mrb[4].mxu0 %v986_v59 }
 0x332   : > { %1874 = vmatprep.mubr.f32.mxu0 %v987_v7  ;;  %2224 = vrsqrt.f32 %v1194_v22 }
 0x335   : > { %1875 = vmatmul.mubr.f32.gmra.mrb[6].mxu0 %v988_v3 }
 0x336   : > { %1877 = vmatprep.mubr.f32.mxu0 %v989_v48 }
 0x339   : > { %1878 = vmatmul.mubr.f32.gmra.mrb[8].mxu0 %v990_v44 }
 0x33a   : > { %1880 = vmatprep.mubr.f32.mxu0 %v991_v56 }
 0x33c   : > { %v2225_v23 = vpop.eup %2224 }
 0x33d   : > { %1881 = vmatmul.mubr.f32.gmra.mrb[10].mxu0 %v992_v52  ;;  %v2994_v47 = vrot.slane %v2225_v23, %v2946_v10 }
 0x33e   : > { %1883 = vmatprep.mubr.f32.mxu0 %v993_v0 }
 0x341   : > { %1884 = vmatmul.mubr.f32.gmra.mrb[12].mxu0 %v994_v5 }
 0x342   : > { %1886 = vmatprep.mubr.f32.mxu0 %v995_v60 }
 0x345   : > { %1887 = vmatmul.mubr.f32.gmra.mrb[14].mxu0 %v996_v9 }
 0x3fc   : > { %v1867_v26 = vpop.f32.mrb[0].mxu0 }
 0x3fd   : > { %v1092_v27 = vadd.f32 %v1867_v26, %v2987_v24  ;;  %v1086_v28 = vpop.f32.mrb[1].mxu0 }
 0x3fe   : > { %v1087_v29 = vadd.f32 %v2987_v24, %v1086_v28 }
 0x3ff   : > { %v1179_v21 = vsub.f32 %v1092_v27, %v2990_v25 }
 0x400   : > { %v1870_v43 = vpop.f32.mrb[2].mxu0  ;;  %v1178_v31 = vsub.f32 %v1087_v29, %v2990_v25 }
 0x401   : > { %v1102_v55 = vadd.f32 %v1870_v43, %v2987_v24  ;;  %v1096_v32 = vpop.f32.mrb[3].mxu0  ;;  %v1203_v33 = vmul.f32 %v2994_v47, %v1179_v21 }
 0x402   : > { %v1097_v34 = vadd.f32 %v2987_v24, %v1096_v32  ;;  %v1202_v51 = vmul.f32 %v2994_v47, %v1178_v31 }
 0x403   : > { %v1181_v63 = vsub.f32 %v1102_v55, %v2990_v25  ;;  %v1219_v30 = vmax.f32 %v1203_v33, 0.0 }
 0x404   : > { %v1180_v10 = vsub.f32 %v1097_v34, %v2990_v25  ;;  %v1873_v35 = vpop.f32.mrb[4].mxu0  ;;  %v1218_v36 = vmax.f32 %v1202_v51, 0.0 }
 0x405   : > { %v1112_v37 = vadd.f32 %v1873_v35, %v2987_v24  ;;  %v1106_v38 = vpop.f32.mrb[5].mxu0  ;;  %v1205_v59 = vmul.f32 %v2994_v47, %v1181_v63 }
 0x406   : > { %v1107_v39 = vadd.f32 %v2987_v24, %v1106_v38  ;;  %1921 = vmatprep.mubr.f32.mxu1 %v1218_v36  ;;  %v1204_v40 = vmul.f32 %v2994_v47, %v1180_v10 }
 0x407   : > { %v1183_v7 = vsub.f32 %v1112_v37, %v2990_v25  ;;  %1922 = vmatmul.mubr.f32.vlgmr.msra.gmra.mrb[0].mxu1 %v1219_v30  ;;  %v1221_v48 = vmax.f32 %v1205_v59, 0.0 }
 0x408   : > { %v1182_v42 = vsub.f32 %v1107_v39, %v2990_v25  ;;  %v1876_v45 = vpop.f32.mrb[6].mxu0  ;;  %v1220_v3 = vmax.f32 %v1204_v40, 0.0 }
 0x409   : > { %v1122_v46 = vadd.f32 %v1876_v45, %v2987_v24  ;;  %v1116_v49 = vpop.f32.mrb[7].mxu0  ;;  %v1207_v50 = vmul.f32 %v2994_v47, %v1183_v7 }
 0x40a   : > { %v1117_v53 = vadd.f32 %v2987_v24, %v1116_v49  ;;  %1924 = vmatprep.mubr.f32.mxu1 %v1220_v3  ;;  %v1206_v44 = vmul.f32 %v2994_v47, %v1182_v42 }
 0x40b   : > { %v1185_v41 = vsub.f32 %v1122_v46, %v2990_v25  ;;  %1925 = vmatmul.mubr.f32.gmra.mrb[2].mxu1 %v1221_v48  ;;  %v1223_v61 = vmax.f32 %v1207_v50, 0.0 }
 0x40c   : > { %v1184_v54 = vsub.f32 %v1117_v53, %v2990_v25  ;;  %v1879_v56 = vpop.f32.mrb[8].mxu0  ;;  %v1222_v57 = vmax.f32 %v1206_v44, 0.0 }
 0x40d   : > { %v1132_v58 = vadd.f32 %v1879_v56, %v2987_v24  ;;  %v1126_v52 = vpop.f32.mrb[9].mxu0  ;;  %v1209_v62 = vmul.f32 %v2994_v47, %v1185_v41 }
 0x40e   : > { %v1127_v0 = vadd.f32 %v2987_v24, %v1126_v52  ;;  %1927 = vmatprep.mubr.f32.mxu1 %v1222_v57  ;;  %v1208_v1 = vmul.f32 %v2994_v47, %v1184_v54 }
 0x40f   : > { %v1187_v5 = vsub.f32 %v1132_v58, %v2990_v25  ;;  %1928 = vmatmul.mubr.f32.gmra.mrb[4].mxu1 %v1223_v61  ;;  %v1225_v2 = vmax.f32 %v1209_v62, 0.0 }
 0x410   : > { %v1186_v6 = vsub.f32 %v1127_v0, %v2990_v25  ;;  %v1882_v60 = vpop.f32.mrb[10].mxu0  ;;  %v1224_v9 = vmax.f32 %v1208_v1, 0.0 }
 0x411   : > { %v1142_v11 = vadd.f32 %v1882_v60, %v2987_v24  ;;  %v1136_v8 = vpop.f32.mrb[11].mxu0  ;;  %v1211_v12 = vmul.f32 %v2994_v47, %v1187_v5 }
 0x412   : > { %v1137_v13 = vadd.f32 %v2987_v24, %v1136_v8  ;;  %1930 = vmatprep.mubr.f32.mxu1 %v1224_v9  ;;  %v1210_v4 = vmul.f32 %v2994_v47, %v1186_v6 }
 0x413   : > { %v1189_v14 = vsub.f32 %v1142_v11, %v2990_v25  ;;  %1931 = vmatmul.mubr.f32.gmra.mrb[6].mxu1 %v1225_v2  ;;  %v1227_v20 = vmax.f32 %v1211_v12, 0.0 }
 0x414   : > { %v1188_v15 = vsub.f32 %v1137_v13, %v2990_v25  ;;  %v1885_v16 = vpop.f32.mrb[12].mxu0  ;;  %v1226_v17 = vmax.f32 %v1210_v4, 0.0 }
 0x415   : > { %v1152_v19 = vadd.f32 %v1885_v16, %v2987_v24  ;;  %v1146_v18 = vpop.f32.mrb[13].mxu0  ;;  %v1213_v22 = vmul.f32 %v2994_v47, %v1189_v14 }
 0x416   : > { %v1147_v23 = vadd.f32 %v2987_v24, %v1146_v18  ;;  %1933 = vmatprep.mubr.f32.mxu1 %v1226_v17  ;;  %v1212_v26 = vmul.f32 %v2994_v47, %v1188_v15 }
 0x417   : > { %v1191_v27 = vsub.f32 %v1152_v19, %v2990_v25  ;;  %1934 = vmatmul.mubr.f32.gmra.mrb[8].mxu1 %v1227_v20  ;;  %v1229_v55 = vmax.f32 %v1213_v22, 0.0 }
 0x418   : > { %v1190_v28 = vsub.f32 %v1147_v23, %v2990_v25  ;;  %v1888_v29 = vpop.f32.mrb[14].mxu0  ;;  %v1228_v21 = vmax.f32 %v1212_v26, 0.0 }
 0x419   : > { %v1162_v43 = vadd.f32 %v1888_v29, %v2987_v24  ;;  %v1156_v31 = vpop.f32.mrb[15].mxu0  ;;  %v1215_v32 = vmul.f32 %v2994_v47, %v1191_v27 }
 0x41a   : > { %v1157_v33 = vadd.f32 %v2987_v24, %v1156_v31  ;;  %1936 = vmatprep.mubr.f32.mxu1 %v1228_v21  ;;  %v1214_v34 = vmul.f32 %v2994_v47, %v1190_v28  ;;  %v3046_v24 = vld [vmem:[%s3179_s21] ss:$0 sm:$0xff] }
 0x41b   : > { %v1193_v51 = vsub.f32 %v1162_v43, %v2990_v25  ;;  %1937 = vmatmul.mubr.f32.gmra.mrb[10].mxu1 %v1229_v55  ;;  %v1231_v35 = vmax.f32 %v1215_v32, 0.0 }
 0x41c   : > { %v1192_v63 = vsub.f32 %v1157_v33, %v2990_v25  ;;  %v1230_v10 = vmax.f32 %v1214_v34, 0.0 }
 0x41d   : > { %v1217_v36 = vmul.f32 %v2994_v47, %v1193_v51 }
 0x41e   : > { %1939 = vmatprep.mubr.f32.mxu1 %v1230_v10  ;;  %v1216_v37 = vmul.f32 %v2994_v47, %v1192_v63 }
 0x41f   : > { %1940 = vmatmul.mubr.f32.gmra.mrb[12].mxu1 %v1231_v35  ;;  %v1233_v30 = vmax.f32 %v1217_v36, 0.0 }
 0x420   : > { %v1232_v38 = vmax.f32 %v1216_v37, 0.0 }
 0x422   : > { %1942 = vmatprep.mubr.f32.mxu1 %v1232_v38 }
 0x423   : > { %1943 = vmatmul.mubr.f32.gmra.mrb[14].mxu1 %v1233_v30 }
 0x4da   : > { %v1923_v59 = vpop.f32.mrb[0].mxu1 }
 0x4db   : > { %v1329_v25 = vadd.f32 %v1923_v59, %v3046_v24  ;;  %v1323_v39 = vpop.f32.mrb[1].mxu1 }
 0x4dc   : > { %v1324_v40 = vadd.f32 %v3046_v24, %v1323_v39 }
 0x4dd   : > { %2226 = vtanh.f32 %v1329_v25 }
 0x4de   : > { %2228 = vtanh.f32 %v1324_v40  ;;  %v1926_v7 = vpop.f32.mrb[2].mxu1 }
 0x4df   : > { %v1339_v47 = vadd.f32 %v1926_v7, %v3046_v24  ;;  %v1333_v42 = vpop.f32.mrb[3].mxu1 }
 0x4e0   : > { %v1334_v45 = vadd.f32 %v3046_v24, %v1333_v42 }
 0x4e1   : > { %2230 = vtanh.f32 %v1339_v47 }
 0x4e2   : > { %2232 = vtanh.f32 %v1334_v45  ;;  %v1929_v3 = vpop.f32.mrb[4].mxu1 }
 0x4e3   : > { %v1349_v46 = vadd.f32 %v1929_v3, %v3046_v24  ;;  %v1343_v49 = vpop.f32.mrb[5].mxu1 }
 0x4e4   : > { %v1344_v48 = vadd.f32 %v3046_v24, %v1343_v49 }
 0x4e5   : > { %2234 = vtanh.f32 %v1349_v46 }
 0x4e6   : > { %2236 = vtanh.f32 %v1344_v48  ;;  %v1932_v50 = vpop.f32.mrb[6].mxu1 }
 0x4e7   : > { %v2227_v53 = vpop.eup %2226  ;;  %v1359_v44 = vadd.f32 %v1932_v50, %v3046_v24  ;;  %v1353_v41 = vpop.f32.mrb[7].mxu1 }
 0x4e8   : > { %v2229_v54 = vpop.eup %2228  ;;  %1419 = vst [vmem:[%s2836_s15 + $0x8] sm:$0xff] %v2227_v53  ;;  %v1354_v56 = vadd.f32 %v3046_v24, %v1353_v41 }
 0x4e9   : > { %1418 = vst [vmem:[%s2836_s15] sm:$0xff] %v2229_v54  ;;  %2238 = vtanh.f32 %v1359_v44 }
 0x4ea   : > { %2240 = vtanh.f32 %v1354_v56  ;;  %v1935_v57 = vpop.f32.mrb[8].mxu1 }
 0x4eb   : > { %v2231_v58 = vpop.eup %2230  ;;  %v1369_v52 = vadd.f32 %v1935_v57, %v3046_v24  ;;  %v1363_v61 = vpop.f32.mrb[9].mxu1 }
 0x4ec   : > { %v2233_v62 = vpop.eup %2232  ;;  %1421 = vst [vmem:[%s2836_s15 + $0x18] sm:$0xff] %v2231_v58  ;;  %v1364_v0 = vadd.f32 %v3046_v24, %v1363_v61 }
 0x4ed   : > { %1420 = vst [vmem:[%s2836_s15 + $0x10] sm:$0xff] %v2233_v62  ;;  %2242 = vtanh.f32 %v1369_v52 }
 0x4ee   : > { %2244 = vtanh.f32 %v1364_v0  ;;  %v1938_v1 = vpop.f32.mrb[10].mxu1 }
 0x4ef   : > { %v2235_v5 = vpop.eup %2234  ;;  %v1379_v6 = vadd.f32 %v1938_v1, %v3046_v24  ;;  %v1373_v60 = vpop.f32.mrb[11].mxu1 }
 0x4f0   : > { %v2237_v9 = vpop.eup %2236  ;;  %1423 = vst [vmem:[%s2836_s15 + $0x28] sm:$0xff] %v2235_v5  ;;  %v1374_v11 = vadd.f32 %v3046_v24, %v1373_v60 }
 0x4f1   : > { %1422 = vst [vmem:[%s2836_s15 + $0x20] sm:$0xff] %v2237_v9  ;;  %2246 = vtanh.f32 %v1379_v6 }
 0x4f2   : > { %2248 = vtanh.f32 %v1374_v11  ;;  %v1941_v8 = vpop.f32.mrb[12].mxu1 }
 0x4f3   : > { %v2239_v2 = vpop.eup %2238  ;;  %v1389_v12 = vadd.f32 %v1941_v8, %v3046_v24  ;;  %v1383_v13 = vpop.f32.mrb[13].mxu1 }
 0x4f4   : > { %v2241_v4 = vpop.eup %2240  ;;  %1425 = vst [vmem:[%s2836_s15 + $0x38] sm:$0xff] %v2239_v2  ;;  %v1384_v14 = vadd.f32 %v3046_v24, %v1383_v13 }
 0x4f5   : > { %1424 = vst [vmem:[%s2836_s15 + $0x30] sm:$0xff] %v2241_v4  ;;  %2250 = vtanh.f32 %v1389_v12 }
 0x4f6   : > { %2252 = vtanh.f32 %v1384_v14  ;;  %v1944_v15 = vpop.f32.mrb[14].mxu1 }
 0x4f7   : > { %v2243_v16 = vpop.eup %2242  ;;  %v1399_v17 = vadd.f32 %v1944_v15, %v3046_v24  ;;  %v1393_v19 = vpop.f32.mrb[15].mxu1 }
 0x4f8   : > { %v2245_v18 = vpop.eup %2244  ;;  %1427 = vst [vmem:[%s2836_s15 + $0x48] sm:$0xff] %v2243_v16  ;;  %v1394_v20 = vadd.f32 %v3046_v24, %v1393_v19 }
 0x4f9   : > { %1426 = vst [vmem:[%s2836_s15 + $0x40] sm:$0xff] %v2245_v18  ;;  %2254 = vtanh.f32 %v1399_v17 }
 0x4fa   : > { %2256 = vtanh.f32 %v1394_v20 }
 0x4fb   : > { %v2247_v22 = vpop.eup %2246 }
 0x4fc   : > { %v2249_v23 = vpop.eup %2248  ;;  %1429 = vst [vmem:[%s2836_s15 + $0x58] sm:$0xff] %v2247_v22 }
 0x4fd   : > { %1428 = vst [vmem:[%s2836_s15 + $0x50] sm:$0xff] %v2249_v23 }
 0x4ff   : > { %v2251_v26 = vpop.eup %2250 }
 0x500   : > { %v2253_v27 = vpop.eup %2252  ;;  %1431 = vst [vmem:[%s2836_s15 + $0x68] sm:$0xff] %v2251_v26 }
 0x501   : > { %1430 = vst [vmem:[%s2836_s15 + $0x60] sm:$0xff] %v2253_v27 }
 0x503   : > { %v2255_v28 = vpop.eup %2254 }
 0x504   : > { %v2257_v29 = vpop.eup %2256  ;;  %1433 = vst [vmem:[%s2836_s15 + $0x78] sm:$0xff] %v2255_v28 }
 0x505   : > { %1432 = vst [vmem:[%s2836_s15 + $0x70] sm:$0xff] %v2257_v29 }
 0x506 PF: > { %s3180_s12 = sld [smem:[#allocation20_spill]]  ;;  %s3181_s23 = sld [smem:[#allocation24_spill]] }
 0x507   : > { %s1448_s17 = sshll.u32 %s2836_s15, 4  ;;  %s1435_s20 = scalar_lea.sflag [#allocation8], %s2763_s7  ;;  %s3087_s17 = int_to_ptr.vmem [resolvable:$true] %s1448_s17 }
 0x508   : > { %s2372_s6 = scalar_lea.vmem %s3087_s17, 2048  ;;  %s2488_s28 = smov [#allocation14]  }
 0x509   : > { %p2373_p11 = scmp.ne.s32.totalorder %s3087_s17, %s2372_s6  ;;  %s2376_s10 = sshll.u32 %s2488_s28, 4  ;;  %s2377_s10 = int_to_ptr.vmem [resolvable:$false] %s2376_s10 }
 0x50a   : > { %s2378_s16 = scalar_lea.vmem %s2377_s10, 4096  ;;  %p2379_p8 = scmp.lt.s32.totalorder %s3087_s17, %s2377_s10 }
 0x50b   : > { %p2374_p1 = pnand %p2373_p11, %p2706_p7  ;;  %p2380_p12 = scmp.lt.s32.totalorder %s2378_s16, %s2372_s6 }
 0x50c   : > { %s1592_s4 = sshll.u32 %s3180_s12, 11 }
 0x50d   : > { %s3084_s9 = scalar_lea.hbm %s3181_s23, %s1592_s4  ;;  %p2375_p2 = pneg %p2374_p1 }
 0x50e   : > { %p2381_p13 = por %p2380_p12, %p2379_p8 }
 0x510   : > { %p2382_p4 = pnand %p2381_p13, %p2375_p2 }
 0x512   : > { %2385 = shalt.err (!%p2382_p4)
}
 0x513   : > { %s2386_s15 = scalar_lea.hbm %s3084_s9, 2048  ;;  %s2390_s21 = scalar_lea.hbm %s3181_s23, 8192 }
 0x514   : > { %p2387_p9 = scmp.ne.s32.totalorder %s3084_s9, %s2386_s15  ;;  %p2391_p3 = scmp.lt.u32.totalorder %s3084_s9, %s3181_s23 }
 0x515   : > { %p2392_p5 = scmp.lt.u32.totalorder %s2390_s21, %s2386_s15  ;;  %p2394_p11 = scmp.lt.u32.totalorder %s2386_s15, %s3084_s9 }
 0x516   : > { %p2388_p6 = pnand %p2387_p9, %p2706_p7 }
 0x517   : > { %p2393_p10 = por %p2392_p5, %p2391_p3 }
 0x518   : > { %p2389_p0 = pneg %p2388_p6 }
 0x519   : > { %p2395_p1 = por %p2394_p11, %p2393_p10 }
 0x51b   : > { %p2396_p2 = pnand %p2395_p1, %p2389_p0 }
 0x51d   : > { %2399 = shalt.err (!%p2396_p2)
}
 0x51e   : > { %s2489_s11 = smov 128   ;;  %s2490_s13 = smov 8  }
 0x51f   : > { %2119 = dma.vmem_to_hbm [thread:$0]  (%p2706_p7), %s3087_s17, 2048, %s3084_s9, %s1435_s20, %s2489_s11, %s2489_s11, %s2490_s13  }
 0x520 PF: > { %s3182_s6 = sld [smem:[#allocation19_spill]]  ;;  %s3183_s28 = sld [smem:[#allocation21_spill]] }
 0x521   : > { %p2146_p8 = scmp.ge.s32.totalorder %s2478_s8, 2 }
 0x526   : > { %s1463_s10 = sand.u32 1, %s3182_s6   ;;  %p3184_p12 = scmp.ne.s32.totalorder %s3183_s28, 0 }
 0x527   : > { %s1464_s16 = scalar_lea.sflag [#allocation8], %s1463_s10 }
 0x528   : > { %p2136_p13 = pnand %p2146_p8, %p3184_p12 }
 0x52a   : > { %2445 = dma.done.wait (!%p2136_p13), %s1464_s16, 2048  }
 0x52b   : > { %2447 = vsyncadd (!%p2136_p13), %s1464_s16, 4294965248  ;;  %s25_s8 = sadd.s32 1, %s2478_s8   ;;  %s3185_s22 = smov %s3194_s24 }
 0x52c   : > { %p22_p4 = scmp.ge.s32.totalorder %s25_s8, 14   ;;  %s3186_s24 = smov %s2454_s25 }
 0x52d   : > { %s3187_s25 = smov %s2458_s26  ;;  %s3188_s26 = smov %s2713_s27 }
 0x52e   : > { %s3189_s27 = smov %s2470_s29  ;;  %s3190_s28 = smov %s2474_s30 }
 0x52f   : > { %s3191_s29 = smov %s3185_s22  ;;  %s3192_s30 = smov %s3198_s18 }
 0x530   :  { %24 = sbr.rel (!%p22_p4) target bundleno = 13 (0xd), region = 125 }
 0x537   :  { %1469 = vsyncpa [#allocation7], 1 }
 0x538   :  { %1471 = vsyncpa [#allocation7 + $0x1], 1 }
 0x539   :  { %1472 = vsyncpa [#allocation10], 1 }
 0x53a   :  { %1473 = vsyncpa [#allocation13], 1 }
 0x53b   :  { %1474 = vsyncpa [#allocation8], 1 }
 0x53c   :  { %1476 = vsyncpa [#allocation8 + $0x1], 1 }

</bundles_post_ra>
